<compile_context>
chip_gen: v7x
topology: tpu7x:2x2x1
jax: 0.10.0
libtpu: 0.0.40
codegen_flags: <defaults>
</compile_context>

<pallas_src>
import functools
import math

import jax
import jax.numpy as jnp
from jax.experimental import pallas as pl
from jax.experimental.pallas import tpu as pltpu

THRESH = 69.968
K = 3  # conv kernel size


def _make_kernel(img_w: int):
    """Kernel closed over the image width (needed for shift offsets/masks)."""

    def kernel(x_ref, w_ref, o_ref, buf_ref):
        # x_ref  : (bb, Cin, H*W)    flattened NCHW input block
        # w_ref  : (9, Cout, Cin)    per-tap conv matrices (flipped ConvT wt)
        # o_ref  : (bb, Cout, H*W)   thresholded output block (NCHW-flattened)
        # buf_ref: (bb, Cin, 2*H*W)  circular scratch: x written twice so all
        #                            9 taps are in-bounds static lane slices
        bb, cin, hw = x_ref.shape
        cout = w_ref.shape[1]

        # Border masks on OUTPUT positions, hoisted out of the batch loop.
        lane = jax.lax.broadcasted_iota(jnp.int32, (cin, hw), 1)
        col = lane % img_w
        left = col == 0                 # kw == 0 tap invalid at w == 0
        right = col == img_w - 1        # kw == 2 tap invalid at w == W-1
        top = lane < img_w              # kh == 0 tap invalid at h == 0
        bottom = lane >= hw - img_w     # kh == 2 tap invalid at h == H-1

        # (start, mask) per tap; start is the static slice offset into the
        # doubled row such that slab[p] == x[(p + d) mod HW], d=(kh-1)W+(kw-1).
        taps = []
        for kh in range(K):
            for kw in range(K):
                d = (kh - 1) * img_w + (kw - 1)
                m = None
                if kh == 0:
                    m = top
                elif kh == K - 1:
                    m = bottom
                if kw == 0:
                    m = left if m is None else (m | left)
                elif kw == K - 1:
                    m = right if m is None else (m | right)
                taps.append((d % hw, m))

        def body(b, carry):
            x_img = x_ref[b]                          # (Cin, HW)
            # Circular double-write: every shifted window is an in-bounds
            # static lane slice of this doubled row.
            buf_ref[b, :, 0:hw] = x_img
            buf_ref[b, :, hw:2 * hw] = x_img

            acc = None
            for t, (start, m) in enumerate(taps):
                slab = buf_ref[b, :, start:start + hw]   # (Cin, HW)
                if m is not None:
                    slab = jnp.where(m, 0.0, slab)
                part = jnp.dot(w_ref[t], slab,
                               preferred_element_type=jnp.float32)
                acc = part if acc is None else acc + part

            o_ref[b, :, :] = (acc > THRESH).astype(jnp.float32)
            return carry

        jax.lax.fori_loop(0, bb, body, 0, unroll=2)

    return kernel


def prepare_weight(wt):
    """ConvTranspose2d weight (Cin, Cout, K, K) -> (K*K, Cout, Cin) per-tap
    conv matrices: kernel spatially flipped, in/out channels swapped."""
    cin, cout = wt.shape[0], wt.shape[1]
    w = wt[:, :, ::-1, ::-1].astype(jnp.float32)   # (Cin, Cout, kh, kw) flipped
    w = jnp.transpose(w, (2, 3, 1, 0))             # (kh, kw, Cout, Cin)
    return w.reshape(K * K, cout, cin)


def default_batch_block(n, target=32):
    """Largest divisor of n that is <= target images per grid step, keeping
    per-step HBM traffic well above the ~0.35us step overhead while bounding
    per-step VMEM on all generations (v5e/v6e/v7x)."""
    best = 1
    for d in range(1, min(n, target) + 1):
        if n % d == 0:
            best = d
    return best


def convt_threshold(x_nchw, w_taps, *, batch_block=None):
    """x_nchw: (N, Cin, H, W) f32; w_taps: prepare_weight(conv_t.weight).

    Returns (N, Cout, H, W) f32 == (conv_transpose(x) > 69.968).float().
    """
    n, cin, h, w_img = x_nchw.shape
    cout = w_taps.shape[1]
    hw = h * w_img

    bb = default_batch_block(n) if batch_block is None else batch_block
    assert n % bb == 0, "batch_block must divide batch"

    x_flat = x_nchw.reshape(n, cin, hw)   # contiguous reshape, no transpose

    out_flat = pl.pallas_call(
        _make_kernel(w_img),
        out_shape=jax.ShapeDtypeStruct((n, cout, hw), jnp.float32),
        grid_spec=pltpu.PrefetchScalarGridSpec(
            num_scalar_prefetch=0,
            grid=(n // bb,),
            in_specs=[
                pl.BlockSpec((bb, cin, hw), lambda i: (i, 0, 0)),
                pl.BlockSpec((K * K, cout, cin), lambda i: (0, 0, 0)),
            ],
            out_specs=pl.BlockSpec((bb, cout, hw), lambda i: (i, 0, 0)),
            scratch_shapes=[pltpu.VMEM((bb, cin, 2 * hw), jnp.float32)],
        ),
        compiler_params=pltpu.CompilerParams(
            # independent batch blocks: pipelined, and sharded across the two
            # TensorCores on v7x
            dimension_semantics=("parallel",),
        ),
    )(x_flat, w_taps)

    return out_flat.reshape(n, cout, h, w_img)   # contiguous, no transpose


if __name__ == "__main__":
    key = jax.random.PRNGKey(0)
    k_x, k_w = jax.random.split(key)

    # Cin=15, Cout=16 fixed by the module; small batch/spatial for the demo.
    N, Cin, Cout, H, W = 4, 15, 16, 16, 16

    # Scale x so the conv output straddles the 69.968 threshold.
    x = jax.random.normal(k_x, (N, Cin, H, W), dtype=jnp.float32) * 120.0

    # Deterministic ConvTranspose2d weight, PyTorch-style uniform init bound.
    fan_in = Cin * K * K
    bound = 1.0 / math.sqrt(fan_in)
    wt = jax.random.uniform(k_w, (Cin, Cout, K, K), dtype=jnp.float32,
                            minval=-bound, maxval=bound)

    w_taps = prepare_weight(wt)          # hoisted: computed once per weight
    bb = 2                               # grid of 2 steps -> exercises pipeline

    fn = jax.jit(functools.partial(convt_threshold, batch_block=bb))
    out = jax.block_until_ready(fn(x, w_taps))
    assert out.shape == (N, Cout, H, W)

    # Reference: equivalent "same" conv with flipped kernel, then threshold.
    w_oihw = jnp.transpose(wt[:, :, ::-1, ::-1], (1, 0, 2, 3))
    y1_ref = jax.lax.conv_general_dilated(
        x, w_oihw, window_strides=(1, 1), padding=((1, 1), (1, 1)),
        dimension_numbers=("NCHW", "OIHW", "NCHW"),
        precision=jax.lax.Precision.HIGHEST)
    ref = (y1_ref > THRESH).astype(jnp.float32)

    # Float accumulation order differs from the reference, so only values
    # essentially AT the threshold are allowed to flip.
    disagree = out != ref
    borderline = jnp.abs(y1_ref - THRESH) < 2e-2
    assert bool(jnp.all(jnp.logical_or(~disagree, borderline)))
    # Sanity: the test exercises both sides of the threshold.
    frac_on = float(jnp.mean(ref))
    assert 0.01 < frac_on < 0.99

    print("KERNEL_OK")
</pallas_src>

<mosaic_0001>
module attributes {stable_mosaic.version = 11 : i64} {
  func.func @kernel(%arg0: i32, %arg1: memref<2x15x256xf32, #tpu.memory_space<vmem>>, %arg2: memref<9x16x15xf32, #tpu.memory_space<vmem>>, %arg3: memref<2x16x256xf32, #tpu.memory_space<vmem>>, %arg4: memref<2x15x512xf32, #tpu.memory_space<vmem>>) attributes {dimension_semantics = [#tpu.dimension_semantics<parallel>], iteration_bounds = array<i64: 2>, scalar_prefetch = 0 : i64, scratch_operands = 1 : i64, tpu.core_type = #tpu.core_type<tc>, window_params = [{transform_indices = @transform_0, window_bounds = array<i64: 2, 15, 256>}, {pipeline_mode = #tpu.pipeline_mode<synchronous>, transform_indices = @transform_1, window_bounds = array<i64: 9, 16, 15>}, {transform_indices = @transform_2, window_bounds = array<i64: 2, 16, 256>}]} {
    %0 = tpu.iota {dimensions = array<i32: 1>} : vector<15x256xi32>
    %c16_i32 = arith.constant 16 : i32
    %c0_i32 = arith.constant 0 : i32
    %1 = arith.cmpi eq, %c16_i32, %c0_i32 : i32
    %c1_i32 = arith.constant 1 : i32
    %2 = arith.select %1, %c1_i32, %c16_i32 : i32
    %3 = vector.broadcast %2 : i32 to vector<15x256xi32>
    %4 = arith.remsi %0, %3 : vector<15x256xi32>
    %c0_i32_0 = arith.constant 0 : i32
    %5 = vector.broadcast %c0_i32_0 : i32 to vector<15x256xi32>
    %6 = arith.cmpi ne, %4, %5 : vector<15x256xi32>
    %c0_i32_1 = arith.constant 0 : i32
    %7 = vector.broadcast %c0_i32_1 : i32 to vector<15x256xi32>
    %8 = arith.cmpi slt, %4, %7 : vector<15x256xi32>
    %c0_i32_2 = arith.constant 0 : i32
    %9 = arith.cmpi slt, %2, %c0_i32_2 : i32
    %10 = vector.broadcast %9 : i1 to vector<15x256xi1>
    %11 = vector.broadcast %10 : vector<15x256xi1> to vector<15x256xi1>
    %12 = arith.xori %8, %11 : vector<15x256xi1>
    %13 = arith.andi %12, %6 : vector<15x256xi1>
    %14 = vector.broadcast %2 : i32 to vector<15x256xi32>
    %15 = arith.addi %4, %14 : vector<15x256xi32>
    %16 = arith.select %13, %15, %4 : vector<15x256xi1>, vector<15x256xi32>
    %c0_i32_3 = arith.constant 0 : i32
    %17 = vector.broadcast %c0_i32_3 : i32 to vector<15x256xi32>
    %18 = arith.cmpi eq, %16, %17 : vector<15x256xi32>
    %c15_i32 = arith.constant 15 : i32
    %19 = vector.broadcast %c15_i32 : i32 to vector<15x256xi32>
    %20 = arith.cmpi eq, %16, %19 : vector<15x256xi32>
    %c16_i32_4 = arith.constant 16 : i32
    %21 = vector.broadcast %c16_i32_4 : i32 to vector<15x256xi32>
    %22 = arith.cmpi slt, %0, %21 : vector<15x256xi32>
    %c240_i32 = arith.constant 240 : i32
    %23 = vector.broadcast %c240_i32 : i32 to vector<15x256xi32>
    %24 = arith.cmpi sge, %0, %23 : vector<15x256xi32>
    %25 = arith.ori %22, %18 : vector<15x256xi1>
    %26 = arith.ori %22, %20 : vector<15x256xi1>
    %27 = arith.ori %24, %18 : vector<15x256xi1>
    %28 = arith.ori %24, %20 : vector<15x256xi1>
    %c0_i32_5 = arith.constant 0 : i32
    %29 = arith.index_cast %c0_i32_5 : i32 to index
    %c0 = arith.constant 0 : index
    %c0_6 = arith.constant 0 : index
    %30 = vector.load %arg1[%29, %c0, %c0_6] : memref<2x15x256xf32, #tpu.memory_space<vmem>>, vector<1x15x256xf32>
    %31 = vector.shape_cast %30 : vector<1x15x256xf32> to vector<15x256xf32>
    %32 = arith.index_cast %c0_i32_5 : i32 to index
    %c0_7 = arith.constant 0 : index
    %c0_8 = arith.constant 0 : index
    %33 = vector.load %arg4[%32, %c0_7, %c0_8] : memref<2x15x512xf32, #tpu.memory_space<vmem>>, vector<1x15x256xf32>
    %34 = vector.shape_cast %33 : vector<1x15x256xf32> to vector<15x256xf32>
    %35 = vector.shape_cast %31 : vector<15x256xf32> to vector<1x15x256xf32>
    tpu.vector_store %arg4[%32, %c0_7, %c0_8], %35 {strides = array<i32>} : memref<2x15x512xf32, #tpu.memory_space<vmem>>, vector<1x15x256xf32>,
    %36 = arith.index_cast %c0_i32_5 : i32 to index
    %c0_9 = arith.constant 0 : index
    %c256 = arith.constant 256 : index
    %37 = vector.load %arg4[%36, %c0_9, %c256] : memref<2x15x512xf32, #tpu.memory_space<vmem>>, vector<1x15x256xf32>
    %38 = vector.shape_cast %37 : vector<1x15x256xf32> to vector<15x256xf32>
    %39 = vector.shape_cast %31 : vector<15x256xf32> to vector<1x15x256xf32>
    tpu.vector_store %arg4[%36, %c0_9, %c256], %39 {strides = array<i32>} : memref<2x15x512xf32, #tpu.memory_space<vmem>>, vector<1x15x256xf32>,
    %40 = arith.index_cast %c0_i32_5 : i32 to index
    %c0_10 = arith.constant 0 : index
    %c239 = arith.constant 239 : index
    %41 = vector.load %arg4[%40, %c0_10, %c239] : memref<2x15x512xf32, #tpu.memory_space<vmem>>, vector<1x15x256xf32>
    %42 = vector.shape_cast %41 : vector<1x15x256xf32> to vector<15x256xf32>
    %cst = arith.constant 0.000000e+00 : f32
    %43 = vector.broadcast %cst : f32 to vector<15x256xf32>
    %44 = arith.select %25, %43, %42 : vector<15x256xi1>, vector<15x256xf32>
    %c0_11 = arith.constant 0 : index
    %c0_12 = arith.constant 0 : index
    %c0_13 = arith.constant 0 : index
    %45 = vector.load %arg2[%c0_11, %c0_12, %c0_13] : memref<9x16x15xf32, #tpu.memory_space<vmem>>, vector<1x16x15xf32>
    %46 = vector.shape_cast %45 : vector<1x16x15xf32> to vector<16x15xf32>
    %cst_14 = arith.constant dense<0.000000e+00> : vector<16x256xf32>
    %47 = tpu.matmul %46, %44, %cst_14 {dimension_numbers = #tpu.dot_dimension_numbers<[1], [0], [0], [1], [0, 0, 1, 1], [], []>} : vector<16x15xf32>, vector<15x256xf32>, vector<16x256xf32> -> vector<16x256xf32>
    %48 = arith.index_cast %c0_i32_5 : i32 to index
    %c0_15 = arith.constant 0 : index
    %c240 = arith.constant 240 : index
    %49 = vector.load %arg4[%48, %c0_15, %c240] : memref<2x15x512xf32, #tpu.memory_space<vmem>>, vector<1x15x256xf32>
    %50 = vector.shape_cast %49 : vector<1x15x256xf32> to vector<15x256xf32>
    %cst_16 = arith.constant 0.000000e+00 : f32
    %51 = vector.broadcast %cst_16 : f32 to vector<15x256xf32>
    %52 = arith.select %22, %51, %50 : vector<15x256xi1>, vector<15x256xf32>
    %c1 = arith.constant 1 : index
    %c0_17 = arith.constant 0 : index
    %c0_18 = arith.constant 0 : index
    %53 = vector.load %arg2[%c1, %c0_17, %c0_18] : memref<9x16x15xf32, #tpu.memory_space<vmem>>, vector<1x16x15xf32>
    %54 = vector.shape_cast %53 : vector<1x16x15xf32> to vector<16x15xf32>
    %cst_19 = arith.constant dense<0.000000e+00> : vector<16x256xf32>
    %55 = tpu.matmul %54, %52, %cst_19 {dimension_numbers = #tpu.dot_dimension_numbers<[1], [0], [0], [1], [0, 0, 1, 1], [], []>} : vector<16x15xf32>, vector<15x256xf32>, vector<16x256xf32> -> vector<16x256xf32>
    %56 = arith.addf %47, %55 : vector<16x256xf32>
    %57 = arith.index_cast %c0_i32_5 : i32 to index
    %c0_20 = arith.constant 0 : index
    %c241 = arith.constant 241 : index
    %58 = vector.load %arg4[%57, %c0_20, %c241] : memref<2x15x512xf32, #tpu.memory_space<vmem>>, vector<1x15x256xf32>
    %59 = vector.shape_cast %58 : vector<1x15x256xf32> to vector<15x256xf32>
    %cst_21 = arith.constant 0.000000e+00 : f32
    %60 = vector.broadcast %cst_21 : f32 to vector<15x256xf32>
    %61 = arith.select %26, %60, %59 : vector<15x256xi1>, vector<15x256xf32>
    %c2 = arith.constant 2 : index
    %c0_22 = arith.constant 0 : index
    %c0_23 = arith.constant 0 : index
    %62 = vector.load %arg2[%c2, %c0_22, %c0_23] : memref<9x16x15xf32, #tpu.memory_space<vmem>>, vector<1x16x15xf32>
    %63 = vector.shape_cast %62 : vector<1x16x15xf32> to vector<16x15xf32>
    %cst_24 = arith.constant dense<0.000000e+00> : vector<16x256xf32>
    %64 = tpu.matmul %63, %61, %cst_24 {dimension_numbers = #tpu.dot_dimension_numbers<[1], [0], [0], [1], [0, 0, 1, 1], [], []>} : vector<16x15xf32>, vector<15x256xf32>, vector<16x256xf32> -> vector<16x256xf32>
    %65 = arith.addf %56, %64 : vector<16x256xf32>
    %66 = arith.index_cast %c0_i32_5 : i32 to index
    %c0_25 = arith.constant 0 : index
    %c255 = arith.constant 255 : index
    %67 = vector.load %arg4[%66, %c0_25, %c255] : memref<2x15x512xf32, #tpu.memory_space<vmem>>, vector<1x15x256xf32>
    %68 = vector.shape_cast %67 : vector<1x15x256xf32> to vector<15x256xf32>
    %cst_26 = arith.constant 0.000000e+00 : f32
    %69 = vector.broadcast %cst_26 : f32 to vector<15x256xf32>
    %70 = arith.select %18, %69, %68 : vector<15x256xi1>, vector<15x256xf32>
    %c3 = arith.constant 3 : index
    %c0_27 = arith.constant 0 : index
    %c0_28 = arith.constant 0 : index
    %71 = vector.load %arg2[%c3, %c0_27, %c0_28] : memref<9x16x15xf32, #tpu.memory_space<vmem>>, vector<1x16x15xf32>
    %72 = vector.shape_cast %71 : vector<1x16x15xf32> to vector<16x15xf32>
    %cst_29 = arith.constant dense<0.000000e+00> : vector<16x256xf32>
    %73 = tpu.matmul %72, %70, %cst_29 {dimension_numbers = #tpu.dot_dimension_numbers<[1], [0], [0], [1], [0, 0, 1, 1], [], []>} : vector<16x15xf32>, vector<15x256xf32>, vector<16x256xf32> -> vector<16x256xf32>
    %74 = arith.addf %65, %73 : vector<16x256xf32>
    %75 = arith.index_cast %c0_i32_5 : i32 to index
    %c0_30 = arith.constant 0 : index
    %c0_31 = arith.constant 0 : index
    %76 = vector.load %arg4[%75, %c0_30, %c0_31] : memref<2x15x512xf32, #tpu.memory_space<vmem>>, vector<1x15x256xf32>
    %77 = vector.shape_cast %76 : vector<1x15x256xf32> to vector<15x256xf32>
    %c4 = arith.constant 4 : index
    %c0_32 = arith.constant 0 : index
    %c0_33 = arith.constant 0 : index
    %78 = vector.load %arg2[%c4, %c0_32, %c0_33] : memref<9x16x15xf32, #tpu.memory_space<vmem>>, vector<1x16x15xf32>
    %79 = vector.shape_cast %78 : vector<1x16x15xf32> to vector<16x15xf32>
    %cst_34 = arith.constant dense<0.000000e+00> : vector<16x256xf32>
    %80 = tpu.matmul %79, %77, %cst_34 {dimension_numbers = #tpu.dot_dimension_numbers<[1], [0], [0], [1], [0, 0, 1, 1], [], []>} : vector<16x15xf32>, vector<15x256xf32>, vector<16x256xf32> -> vector<16x256xf32>
    %81 = arith.addf %74, %80 : vector<16x256xf32>
    %82 = arith.index_cast %c0_i32_5 : i32 to index
    %c0_35 = arith.constant 0 : index
    %c1_36 = arith.constant 1 : index
    %83 = vector.load %arg4[%82, %c0_35, %c1_36] : memref<2x15x512xf32, #tpu.memory_space<vmem>>, vector<1x15x256xf32>
    %84 = vector.shape_cast %83 : vector<1x15x256xf32> to vector<15x256xf32>
    %cst_37 = arith.constant 0.000000e+00 : f32
    %85 = vector.broadcast %cst_37 : f32 to vector<15x256xf32>
    %86 = arith.select %20, %85, %84 : vector<15x256xi1>, vector<15x256xf32>
    %c5 = arith.constant 5 : index
    %c0_38 = arith.constant 0 : index
    %c0_39 = arith.constant 0 : index
    %87 = vector.load %arg2[%c5, %c0_38, %c0_39] : memref<9x16x15xf32, #tpu.memory_space<vmem>>, vector<1x16x15xf32>
    %88 = vector.shape_cast %87 : vector<1x16x15xf32> to vector<16x15xf32>
    %cst_40 = arith.constant dense<0.000000e+00> : vector<16x256xf32>
    %89 = tpu.matmul %88, %86, %cst_40 {dimension_numbers = #tpu.dot_dimension_numbers<[1], [0], [0], [1], [0, 0, 1, 1], [], []>} : vector<16x15xf32>, vector<15x256xf32>, vector<16x256xf32> -> vector<16x256xf32>
    %90 = arith.addf %81, %89 : vector<16x256xf32>
    %91 = arith.index_cast %c0_i32_5 : i32 to index
    %c0_41 = arith.constant 0 : index
    %c15 = arith.constant 15 : index
    %92 = vector.load %arg4[%91, %c0_41, %c15] : memref<2x15x512xf32, #tpu.memory_space<vmem>>, vector<1x15x256xf32>
    %93 = vector.shape_cast %92 : vector<1x15x256xf32> to vector<15x256xf32>
    %cst_42 = arith.constant 0.000000e+00 : f32
    %94 = vector.broadcast %cst_42 : f32 to vector<15x256xf32>
    %95 = arith.select %27, %94, %93 : vector<15x256xi1>, vector<15x256xf32>
    %c6 = arith.constant 6 : index
    %c0_43 = arith.constant 0 : index
    %c0_44 = arith.constant 0 : index
    %96 = vector.load %arg2[%c6, %c0_43, %c0_44] : memref<9x16x15xf32, #tpu.memory_space<vmem>>, vector<1x16x15xf32>
    %97 = vector.shape_cast %96 : vector<1x16x15xf32> to vector<16x15xf32>
    %cst_45 = arith.constant dense<0.000000e+00> : vector<16x256xf32>
    %98 = tpu.matmul %97, %95, %cst_45 {dimension_numbers = #tpu.dot_dimension_numbers<[1], [0], [0], [1], [0, 0, 1, 1], [], []>} : vector<16x15xf32>, vector<15x256xf32>, vector<16x256xf32> -> vector<16x256xf32>
    %99 = arith.addf %90, %98 : vector<16x256xf32>
    %100 = arith.index_cast %c0_i32_5 : i32 to index
    %c0_46 = arith.constant 0 : index
    %c16 = arith.constant 16 : index
    %101 = vector.load %arg4[%100, %c0_46, %c16] : memref<2x15x512xf32, #tpu.memory_space<vmem>>, vector<1x15x256xf32>
    %102 = vector.shape_cast %101 : vector<1x15x256xf32> to vector<15x256xf32>
    %cst_47 = arith.constant 0.000000e+00 : f32
    %103 = vector.broadcast %cst_47 : f32 to vector<15x256xf32>
    %104 = arith.select %24, %103, %102 : vector<15x256xi1>, vector<15x256xf32>
    %c7 = arith.constant 7 : index
    %c0_48 = arith.constant 0 : index
    %c0_49 = arith.constant 0 : index
    %105 = vector.load %arg2[%c7, %c0_48, %c0_49] : memref<9x16x15xf32, #tpu.memory_space<vmem>>, vector<1x16x15xf32>
    %106 = vector.shape_cast %105 : vector<1x16x15xf32> to vector<16x15xf32>
    %cst_50 = arith.constant dense<0.000000e+00> : vector<16x256xf32>
    %107 = tpu.matmul %106, %104, %cst_50 {dimension_numbers = #tpu.dot_dimension_numbers<[1], [0], [0], [1], [0, 0, 1, 1], [], []>} : vector<16x15xf32>, vector<15x256xf32>, vector<16x256xf32> -> vector<16x256xf32>
    %108 = arith.addf %99, %107 : vector<16x256xf32>
    %109 = arith.index_cast %c0_i32_5 : i32 to index
    %c0_51 = arith.constant 0 : index
    %c17 = arith.constant 17 : index
    %110 = vector.load %arg4[%109, %c0_51, %c17] : memref<2x15x512xf32, #tpu.memory_space<vmem>>, vector<1x15x256xf32>
    %111 = vector.shape_cast %110 : vector<1x15x256xf32> to vector<15x256xf32>
    %cst_52 = arith.constant 0.000000e+00 : f32
    %112 = vector.broadcast %cst_52 : f32 to vector<15x256xf32>
    %113 = arith.select %28, %112, %111 : vector<15x256xi1>, vector<15x256xf32>
    %c8 = arith.constant 8 : index
    %c0_53 = arith.constant 0 : index
    %c0_54 = arith.constant 0 : index
    %114 = vector.load %arg2[%c8, %c0_53, %c0_54] : memref<9x16x15xf32, #tpu.memory_space<vmem>>, vector<1x16x15xf32>
    %115 = vector.shape_cast %114 : vector<1x16x15xf32> to vector<16x15xf32>
    %cst_55 = arith.constant dense<0.000000e+00> : vector<16x256xf32>
    %116 = tpu.matmul %115, %113, %cst_55 {dimension_numbers = #tpu.dot_dimension_numbers<[1], [0], [0], [1], [0, 0, 1, 1], [], []>} : vector<16x15xf32>, vector<15x256xf32>, vector<16x256xf32> -> vector<16x256xf32>
    %117 = arith.addf %108, %116 : vector<16x256xf32>
    %cst_56 = arith.constant 6.996800e+01 : f32
    %118 = vector.broadcast %cst_56 : f32 to vector<16x256xf32>
    %119 = arith.cmpf ogt, %117, %118 : vector<16x256xf32>
    %120 = arith.extui %119 : vector<16x256xi1> to vector<16x256xi32>
    %121 = arith.sitofp %120 : vector<16x256xi32> to vector<16x256xf32>
    %122 = arith.index_cast %c0_i32_5 : i32 to index
    %c0_57 = arith.constant 0 : index
    %c0_58 = arith.constant 0 : index
    %123 = vector.load %arg3[%122, %c0_57, %c0_58] : memref<2x16x256xf32, #tpu.memory_space<vmem>>, vector<1x16x256xf32>
    %124 = vector.shape_cast %123 : vector<1x16x256xf32> to vector<16x256xf32>
    %125 = vector.shape_cast %121 : vector<16x256xf32> to vector<1x16x256xf32>
    tpu.vector_store %arg3[%122, %c0_57, %c0_58], %125 {strides = array<i32>} : memref<2x16x256xf32, #tpu.memory_space<vmem>>, vector<1x16x256xf32>,
    %c1_i32_59 = arith.constant 1 : i32
    %126 = arith.index_cast %c1_i32_59 : i32 to index
    %c0_60 = arith.constant 0 : index
    %c0_61 = arith.constant 0 : index
    %127 = vector.load %arg1[%126, %c0_60, %c0_61] : memref<2x15x256xf32, #tpu.memory_space<vmem>>, vector<1x15x256xf32>
    %128 = vector.shape_cast %127 : vector<1x15x256xf32> to vector<15x256xf32>
    %129 = arith.index_cast %c1_i32_59 : i32 to index
    %c0_62 = arith.constant 0 : index
    %c0_63 = arith.constant 0 : index
    %130 = vector.load %arg4[%129, %c0_62, %c0_63] : memref<2x15x512xf32, #tpu.memory_space<vmem>>, vector<1x15x256xf32>
    %131 = vector.shape_cast %130 : vector<1x15x256xf32> to vector<15x256xf32>
    %132 = vector.shape_cast %128 : vector<15x256xf32> to vector<1x15x256xf32>
    tpu.vector_store %arg4[%129, %c0_62, %c0_63], %132 {strides = array<i32>} : memref<2x15x512xf32, #tpu.memory_space<vmem>>, vector<1x15x256xf32>,
    %133 = arith.index_cast %c1_i32_59 : i32 to index
    %c0_64 = arith.constant 0 : index
    %c256_65 = arith.constant 256 : index
    %134 = vector.load %arg4[%133, %c0_64, %c256_65] : memref<2x15x512xf32, #tpu.memory_space<vmem>>, vector<1x15x256xf32>
    %135 = vector.shape_cast %134 : vector<1x15x256xf32> to vector<15x256xf32>
    %136 = vector.shape_cast %128 : vector<15x256xf32> to vector<1x15x256xf32>
    tpu.vector_store %arg4[%133, %c0_64, %c256_65], %136 {strides = array<i32>} : memref<2x15x512xf32, #tpu.memory_space<vmem>>, vector<1x15x256xf32>,
    %137 = arith.index_cast %c1_i32_59 : i32 to index
    %c0_66 = arith.constant 0 : index
    %c239_67 = arith.constant 239 : index
    %138 = vector.load %arg4[%137, %c0_66, %c239_67] : memref<2x15x512xf32, #tpu.memory_space<vmem>>, vector<1x15x256xf32>
    %139 = vector.shape_cast %138 : vector<1x15x256xf32> to vector<15x256xf32>
    %cst_68 = arith.constant 0.000000e+00 : f32
    %140 = vector.broadcast %cst_68 : f32 to vector<15x256xf32>
    %141 = arith.select %25, %140, %139 : vector<15x256xi1>, vector<15x256xf32>
    %c0_69 = arith.constant 0 : index
    %c0_70 = arith.constant 0 : index
    %c0_71 = arith.constant 0 : index
    %142 = vector.load %arg2[%c0_69, %c0_70, %c0_71] : memref<9x16x15xf32, #tpu.memory_space<vmem>>, vector<1x16x15xf32>
    %143 = vector.shape_cast %142 : vector<1x16x15xf32> to vector<16x15xf32>
    %cst_72 = arith.constant dense<0.000000e+00> : vector<16x256xf32>
    %144 = tpu.matmul %143, %141, %cst_72 {dimension_numbers = #tpu.dot_dimension_numbers<[1], [0], [0], [1], [0, 0, 1, 1], [], []>} : vector<16x15xf32>, vector<15x256xf32>, vector<16x256xf32> -> vector<16x256xf32>
    %145 = arith.index_cast %c1_i32_59 : i32 to index
    %c0_73 = arith.constant 0 : index
    %c240_74 = arith.constant 240 : index
    %146 = vector.load %arg4[%145, %c0_73, %c240_74] : memref<2x15x512xf32, #tpu.memory_space<vmem>>, vector<1x15x256xf32>
    %147 = vector.shape_cast %146 : vector<1x15x256xf32> to vector<15x256xf32>
    %cst_75 = arith.constant 0.000000e+00 : f32
    %148 = vector.broadcast %cst_75 : f32 to vector<15x256xf32>
    %149 = arith.select %22, %148, %147 : vector<15x256xi1>, vector<15x256xf32>
    %c1_76 = arith.constant 1 : index
    %c0_77 = arith.constant 0 : index
    %c0_78 = arith.constant 0 : index
    %150 = vector.load %arg2[%c1_76, %c0_77, %c0_78] : memref<9x16x15xf32, #tpu.memory_space<vmem>>, vector<1x16x15xf32>
    %151 = vector.shape_cast %150 : vector<1x16x15xf32> to vector<16x15xf32>
    %cst_79 = arith.constant dense<0.000000e+00> : vector<16x256xf32>
    %152 = tpu.matmul %151, %149, %cst_79 {dimension_numbers = #tpu.dot_dimension_numbers<[1], [0], [0], [1], [0, 0, 1, 1], [], []>} : vector<16x15xf32>, vector<15x256xf32>, vector<16x256xf32> -> vector<16x256xf32>
    %153 = arith.addf %144, %152 : vector<16x256xf32>
    %154 = arith.index_cast %c1_i32_59 : i32 to index
    %c0_80 = arith.constant 0 : index
    %c241_81 = arith.constant 241 : index
    %155 = vector.load %arg4[%154, %c0_80, %c241_81] : memref<2x15x512xf32, #tpu.memory_space<vmem>>, vector<1x15x256xf32>
    %156 = vector.shape_cast %155 : vector<1x15x256xf32> to vector<15x256xf32>
    %cst_82 = arith.constant 0.000000e+00 : f32
    %157 = vector.broadcast %cst_82 : f32 to vector<15x256xf32>
    %158 = arith.select %26, %157, %156 : vector<15x256xi1>, vector<15x256xf32>
    %c2_83 = arith.constant 2 : index
    %c0_84 = arith.constant 0 : index
    %c0_85 = arith.constant 0 : index
    %159 = vector.load %arg2[%c2_83, %c0_84, %c0_85] : memref<9x16x15xf32, #tpu.memory_space<vmem>>, vector<1x16x15xf32>
    %160 = vector.shape_cast %159 : vector<1x16x15xf32> to vector<16x15xf32>
    %cst_86 = arith.constant dense<0.000000e+00> : vector<16x256xf32>
    %161 = tpu.matmul %160, %158, %cst_86 {dimension_numbers = #tpu.dot_dimension_numbers<[1], [0], [0], [1], [0, 0, 1, 1], [], []>} : vector<16x15xf32>, vector<15x256xf32>, vector<16x256xf32> -> vector<16x256xf32>
    %162 = arith.addf %153, %161 : vector<16x256xf32>
    %163 = arith.index_cast %c1_i32_59 : i32 to index
    %c0_87 = arith.constant 0 : index
    %c255_88 = arith.constant 255 : index
    %164 = vector.load %arg4[%163, %c0_87, %c255_88] : memref<2x15x512xf32, #tpu.memory_space<vmem>>, vector<1x15x256xf32>
    %165 = vector.shape_cast %164 : vector<1x15x256xf32> to vector<15x256xf32>
    %cst_89 = arith.constant 0.000000e+00 : f32
    %166 = vector.broadcast %cst_89 : f32 to vector<15x256xf32>
    %167 = arith.select %18, %166, %165 : vector<15x256xi1>, vector<15x256xf32>
    %c3_90 = arith.constant 3 : index
    %c0_91 = arith.constant 0 : index
    %c0_92 = arith.constant 0 : index
    %168 = vector.load %arg2[%c3_90, %c0_91, %c0_92] : memref<9x16x15xf32, #tpu.memory_space<vmem>>, vector<1x16x15xf32>
    %169 = vector.shape_cast %168 : vector<1x16x15xf32> to vector<16x15xf32>
    %cst_93 = arith.constant dense<0.000000e+00> : vector<16x256xf32>
    %170 = tpu.matmul %169, %167, %cst_93 {dimension_numbers = #tpu.dot_dimension_numbers<[1], [0], [0], [1], [0, 0, 1, 1], [], []>} : vector<16x15xf32>, vector<15x256xf32>, vector<16x256xf32> -> vector<16x256xf32>
    %171 = arith.addf %162, %170 : vector<16x256xf32>
    %172 = arith.index_cast %c1_i32_59 : i32 to index
    %c0_94 = arith.constant 0 : index
    %c0_95 = arith.constant 0 : index
    %173 = vector.load %arg4[%172, %c0_94, %c0_95] : memref<2x15x512xf32, #tpu.memory_space<vmem>>, vector<1x15x256xf32>
    %174 = vector.shape_cast %173 : vector<1x15x256xf32> to vector<15x256xf32>
    %c4_96 = arith.constant 4 : index
    %c0_97 = arith.constant 0 : index
    %c0_98 = arith.constant 0 : index
    %175 = vector.load %arg2[%c4_96, %c0_97, %c0_98] : memref<9x16x15xf32, #tpu.memory_space<vmem>>, vector<1x16x15xf32>
    %176 = vector.shape_cast %175 : vector<1x16x15xf32> to vector<16x15xf32>
    %cst_99 = arith.constant dense<0.000000e+00> : vector<16x256xf32>
    %177 = tpu.matmul %176, %174, %cst_99 {dimension_numbers = #tpu.dot_dimension_numbers<[1], [0], [0], [1], [0, 0, 1, 1], [], []>} : vector<16x15xf32>, vector<15x256xf32>, vector<16x256xf32> -> vector<16x256xf32>
    %178 = arith.addf %171, %177 : vector<16x256xf32>
    %179 = arith.index_cast %c1_i32_59 : i32 to index
    %c0_100 = arith.constant 0 : index
    %c1_101 = arith.constant 1 : index
    %180 = vector.load %arg4[%179, %c0_100, %c1_101] : memref<2x15x512xf32, #tpu.memory_space<vmem>>, vector<1x15x256xf32>
    %181 = vector.shape_cast %180 : vector<1x15x256xf32> to vector<15x256xf32>
    %cst_102 = arith.constant 0.000000e+00 : f32
    %182 = vector.broadcast %cst_102 : f32 to vector<15x256xf32>
    %183 = arith.select %20, %182, %181 : vector<15x256xi1>, vector<15x256xf32>
    %c5_103 = arith.constant 5 : index
    %c0_104 = arith.constant 0 : index
    %c0_105 = arith.constant 0 : index
    %184 = vector.load %arg2[%c5_103, %c0_104, %c0_105] : memref<9x16x15xf32, #tpu.memory_space<vmem>>, vector<1x16x15xf32>
    %185 = vector.shape_cast %184 : vector<1x16x15xf32> to vector<16x15xf32>
    %cst_106 = arith.constant dense<0.000000e+00> : vector<16x256xf32>
    %186 = tpu.matmul %185, %183, %cst_106 {dimension_numbers = #tpu.dot_dimension_numbers<[1], [0], [0], [1], [0, 0, 1, 1], [], []>} : vector<16x15xf32>, vector<15x256xf32>, vector<16x256xf32> -> vector<16x256xf32>
    %187 = arith.addf %178, %186 : vector<16x256xf32>
    %188 = arith.index_cast %c1_i32_59 : i32 to index
    %c0_107 = arith.constant 0 : index
    %c15_108 = arith.constant 15 : index
    %189 = vector.load %arg4[%188, %c0_107, %c15_108] : memref<2x15x512xf32, #tpu.memory_space<vmem>>, vector<1x15x256xf32>
    %190 = vector.shape_cast %189 : vector<1x15x256xf32> to vector<15x256xf32>
    %cst_109 = arith.constant 0.000000e+00 : f32
    %191 = vector.broadcast %cst_109 : f32 to vector<15x256xf32>
    %192 = arith.select %27, %191, %190 : vector<15x256xi1>, vector<15x256xf32>
    %c6_110 = arith.constant 6 : index
    %c0_111 = arith.constant 0 : index
    %c0_112 = arith.constant 0 : index
    %193 = vector.load %arg2[%c6_110, %c0_111, %c0_112] : memref<9x16x15xf32, #tpu.memory_space<vmem>>, vector<1x16x15xf32>
    %194 = vector.shape_cast %193 : vector<1x16x15xf32> to vector<16x15xf32>
    %cst_113 = arith.constant dense<0.000000e+00> : vector<16x256xf32>
    %195 = tpu.matmul %194, %192, %cst_113 {dimension_numbers = #tpu.dot_dimension_numbers<[1], [0], [0], [1], [0, 0, 1, 1], [], []>} : vector<16x15xf32>, vector<15x256xf32>, vector<16x256xf32> -> vector<16x256xf32>
    %196 = arith.addf %187, %195 : vector<16x256xf32>
    %197 = arith.index_cast %c1_i32_59 : i32 to index
    %c0_114 = arith.constant 0 : index
    %c16_115 = arith.constant 16 : index
    %198 = vector.load %arg4[%197, %c0_114, %c16_115] : memref<2x15x512xf32, #tpu.memory_space<vmem>>, vector<1x15x256xf32>
    %199 = vector.shape_cast %198 : vector<1x15x256xf32> to vector<15x256xf32>
    %cst_116 = arith.constant 0.000000e+00 : f32
    %200 = vector.broadcast %cst_116 : f32 to vector<15x256xf32>
    %201 = arith.select %24, %200, %199 : vector<15x256xi1>, vector<15x256xf32>
    %c7_117 = arith.constant 7 : index
    %c0_118 = arith.constant 0 : index
    %c0_119 = arith.constant 0 : index
    %202 = vector.load %arg2[%c7_117, %c0_118, %c0_119] : memref<9x16x15xf32, #tpu.memory_space<vmem>>, vector<1x16x15xf32>
    %203 = vector.shape_cast %202 : vector<1x16x15xf32> to vector<16x15xf32>
    %cst_120 = arith.constant dense<0.000000e+00> : vector<16x256xf32>
    %204 = tpu.matmul %203, %201, %cst_120 {dimension_numbers = #tpu.dot_dimension_numbers<[1], [0], [0], [1], [0, 0, 1, 1], [], []>} : vector<16x15xf32>, vector<15x256xf32>, vector<16x256xf32> -> vector<16x256xf32>
    %205 = arith.addf %196, %204 : vector<16x256xf32>
    %206 = arith.index_cast %c1_i32_59 : i32 to index
    %c0_121 = arith.constant 0 : index
    %c17_122 = arith.constant 17 : index
    %207 = vector.load %arg4[%206, %c0_121, %c17_122] : memref<2x15x512xf32, #tpu.memory_space<vmem>>, vector<1x15x256xf32>
    %208 = vector.shape_cast %207 : vector<1x15x256xf32> to vector<15x256xf32>
    %cst_123 = arith.constant 0.000000e+00 : f32
    %209 = vector.broadcast %cst_123 : f32 to vector<15x256xf32>
    %210 = arith.select %28, %209, %208 : vector<15x256xi1>, vector<15x256xf32>
    %c8_124 = arith.constant 8 : index
    %c0_125 = arith.constant 0 : index
    %c0_126 = arith.constant 0 : index
    %211 = vector.load %arg2[%c8_124, %c0_125, %c0_126] : memref<9x16x15xf32, #tpu.memory_space<vmem>>, vector<1x16x15xf32>
    %212 = vector.shape_cast %211 : vector<1x16x15xf32> to vector<16x15xf32>
    %cst_127 = arith.constant dense<0.000000e+00> : vector<16x256xf32>
    %213 = tpu.matmul %212, %210, %cst_127 {dimension_numbers = #tpu.dot_dimension_numbers<[1], [0], [0], [1], [0, 0, 1, 1], [], []>} : vector<16x15xf32>, vector<15x256xf32>, vector<16x256xf32> -> vector<16x256xf32>
    %214 = arith.addf %205, %213 : vector<16x256xf32>
    %cst_128 = arith.constant 6.996800e+01 : f32
    %215 = vector.broadcast %cst_128 : f32 to vector<16x256xf32>
    %216 = arith.cmpf ogt, %214, %215 : vector<16x256xf32>
    %217 = arith.extui %216 : vector<16x256xi1> to vector<16x256xi32>
    %218 = arith.sitofp %217 : vector<16x256xi32> to vector<16x256xf32>
    %219 = arith.index_cast %c1_i32_59 : i32 to index
    %c0_129 = arith.constant 0 : index
    %c0_130 = arith.constant 0 : index
    %220 = vector.load %arg3[%219, %c0_129, %c0_130] : memref<2x16x256xf32, #tpu.memory_space<vmem>>, vector<1x16x256xf32>
    %221 = vector.shape_cast %220 : vector<1x16x256xf32> to vector<16x256xf32>
    %222 = vector.shape_cast %218 : vector<16x256xf32> to vector<1x16x256xf32>
    tpu.vector_store %arg3[%219, %c0_129, %c0_130], %222 {strides = array<i32>} : memref<2x16x256xf32, #tpu.memory_space<vmem>>, vector<1x16x256xf32>,
    %c2_i32 = arith.constant 2 : i32
    return
  }
  func.func @transform_0(%arg0: i32) -> (i32, i32, i32) {
    %c0_i32 = arith.constant 0 : i32
    %c0_i32_0 = arith.constant 0 : i32
    %c0_i32_1 = arith.constant 0 : i32
    return %arg0, %c0_i32, %c0_i32_0 : i32, i32, i32
  }
  func.func @transform_1(%arg0: i32) -> (i32, i32, i32) {
    %c0_i32 = arith.constant 0 : i32
    %c0_i32_0 = arith.constant 0 : i32
    %c0_i32_1 = arith.constant 0 : i32
    %c0_i32_2 = arith.constant 0 : i32
    return %c0_i32, %c0_i32_0, %c0_i32_1 : i32, i32, i32
  }
  func.func @transform_2(%arg0: i32) -> (i32, i32, i32) {
    %c0_i32 = arith.constant 0 : i32
    %c0_i32_0 = arith.constant 0 : i32
    %c0_i32_1 = arith.constant 0 : i32
    return %arg0, %c0_i32, %c0_i32_0 : i32, i32, i32
  }
}

</mosaic_0001>

<bundles_post_ra>
// kernel: convt_threshold.1
= control target key start
LH: loop header
LB: loop body
LE: loop exit
PB: predicated region body
PF: predicated region fallthrough
CT: control target
= control target key end

     0   :  { %s3117_s9 = smov 0   ;;  %s3654_s0 = inlined_call_operand.vmem [shape: f32[4,15,256], index: 0, kind: input, shape index: {}]   ;;  %s3655_s1 = inlined_call_operand.vmem [shape: f32[9,16,15], index: 1, kind: input, shape index: {}]   ;;  %s3656_s2 = inlined_call_operand.vmem [shape: f32[4,16,256], index: 2, kind: output, shape index: {}]  }
   0x1 LB: > { %s2463_s10 = sadd.s32 4294967295, %s3090_s9   ;;  %p2467_p0 = scmp.ge.s32.totalorder %s3090_s9, 1  ;;  %s3090_s9 = sphi %s3117_s9, %s12_s9  }
   0x2   : > { %p114_p1 = scmp.lt.s32.totalorder %s3090_s9, 3 }
   0x4   : > { %p115_p2 = pnand %p2467_p0, %p114_p1 }
   0x5   : > { %s2468_s11 = sshll.u32 (!%p115_p2), %s2463_s10, 1  ;;  %s3092_s16 = smov (!%p115_p2), 16   ;;  %v3093_v21 = vmov (!%p115_p2), 0.0   ;;  %v152_v40 = vlaneseq (!%p115_p2)  ;;  %vm258_vm0 = vcmask (!%p115_p2), 130048   ;;  %vm281_vm2 = vcmask (!%p115_p2), 1046528  }
   0x6   : > { %118 = sbr.rel (%p115_p2) target bundleno = 463 (0x1cf), region = 28  ;;  %p139_p3 = scmp.lt.s32.totalorder (!%p115_p2), %s2468_s11, 3  ;;  %352 = vmatprep.mubr.f32.mxu0 (!%p115_p2), %v3093_v21  ;;  %1461 = vmatprep.mubr.f32.mxu1 (!%p115_p2), %v3093_v21  ;;  %vm3101_vm4 = vmmov (!%p115_p2), 1   ;;  %vm231_vm7 = vcmask (!%p115_p2), 138240   ;;  %vm274_vm8 = vcmask (!%p115_p2), 121856  }
   0x7   : > { %s3094_s17 = smov (!%p115_p2), 17   ;;  %s3095_s18 = smov (!%p115_p2), 15   ;;  %v3159_v42 = vand.u32 (!%p115_p2), 127, %v152_v40  ;;  %vm3171_vm5 = vmpackc.low (!%p115_p2), %vm281_vm2, %vm3101_vm4 }
   0x8   : > { %s3096_s19 = smov (!%p115_p2), 1   ;;  %s3097_s20 = smov (!%p115_p2), 127  }
   0x9   : > { %s3098_s21 = smov (!%p115_p2), 113   ;;  %s3099_s22 = smov (!%p115_p2), 112   ;;  %vm183_vm1 = vcmp.lt.s32.totalorder (!%p115_p2), %v3159_v42, 16  ;;  %v3163_v49 = vadd.s32 (!%p115_p2), 128, %v3159_v42 }
   0xa   : > { %s3100_s23 = smov (!%p115_p2), 111   ;;  %vm2476_vm3 = vmneg (!%p115_p2), %vm183_vm1 }
   0xb   : > { %vm3179_vm6 = vmpackc.low (!%p115_p2), %vm281_vm2, %vm2476_vm3  ;;  %v166_v62 = vand.u32 (!%p115_p2), 15, %v3163_v49 }
   0xd   : > { %s3698_s11 = smov (!%p139_p3, %s2468_s11), 3  ;;  %vm3195_vm9 = vcmp.eq.s32.totalorder %v166_v62, 0 }
   0xe   : > { %s2652_s12 = sshll.u32 %s3698_s11, 5  ;;  %vm2482_vm11 = vmneg %vm3195_vm9 }
   0xf   : > { %s143_s15 = scalar_lea.vmem %s3654_s0, %s2652_s12  ;;  %vm3234_vm13 = vmpackc.low %vm281_vm2, %vm2482_vm11  ;;  %s3633_s10 = scalar_lea.vmem %s3656_s2, %s2652_s12 }
  0x10   : > { %v3133_v0 = vld [vmem:[%s143_s15 + $0x8] sm:$0xff]  ;;  %v198_v1 = vld [vmem:[%s143_s15 + $0x18] sm:$0x7f]  ;;  %v3135_v2 = vld [vmem:[%s143_s15] sm:$0xff] }
  0x11   : > { %202 = vst [vmem:[#allocation2 + $0x28] sm:$0x7f] %v198_v1  ;;  %206 = vst [vmem:[#allocation2 + $0x38] sm:$0x7f] %v198_v1  ;;  %v2844_v3 = vpack.i.bf16 %v3133_v0, %v3135_v2  ;;  %v3139_v4 = vld [vmem:[%s143_s15 + $0x20] sm:$0xff]  ;;  %v3141_v5 = vld [vmem:[%s143_s15 + $0x28] sm:$0xff]  ;;  %v2969_v30 = vpack.i.bf16 %v3135_v2, %v3133_v0 }
  0x12   : > { %v197_v6 = vld [vmem:[%s143_s15 + $0x10] sm:$0x7f]  ;;  %v2561_v7 = vld [vmem:[%s143_s15 + $0x38] sm:$0x7f]  ;;  %v2859_v16 = vpack.i.bf16 %v3141_v5, %v3139_v4  ;;  %v2984_v34 = vpack.i.bf16 %v3139_v4, %v3141_v5 }
  0x13   : > { %205 = vst [vmem:[#allocation2 + $0x30] sm:$0x7f] %v197_v6  ;;  %201 = vst [vmem:[#allocation2 + $0x20] sm:$0x7f] %v197_v6  ;;  %v2560_v8 = vld [vmem:[%s143_s15 + $0x30] sm:$0x7f]  ;;  %2845 = vrot.lane.b32.xlu0 %v2844_v3, %s3092_s16 }
  0x14   : > { %1320 = vst [vmem:[#allocation2 + $0x78] sm:$0x7f] %v2561_v7  ;;  %1316 = vst [vmem:[#allocation2 + $0x68] sm:$0x7f] %v2561_v7 }
  0x15   : > { %1319 = vst [vmem:[#allocation2 + $0x70] sm:$0x7f] %v2560_v8  ;;  %1315 = vst [vmem:[#allocation2 + $0x60] sm:$0x7f] %v2560_v8  ;;  %v159_v8 = vand.u32 15, %v3159_v42 }
  0x17   : > { %vm3206_vm10 = vcmp.eq.s32.totalorder %v159_v8, 0  ;;  %vm3277_vm3 = vcmp.eq.s32.totalorder %v159_v8, 15 }
  0x18   : > { %v212_v9 = vld [vmem:[#allocation2 + $0x38] sm:$0x7f]  ;;  %v210_v10 = vld [vmem:[#allocation2 + $0x28] sm:$0x7f]  ;;  %vm3226_vm12 = vmor %vm183_vm1, %vm3206_vm10 }
  0x19   : > { %v2854_v11 = vpack.i.bf16 %v3133_v0, %v212_v9  ;;  %v799_v25 = vld [vmem:[#allocation2 + $0x28] sm:$0x7f]  ;;  %vm2484_vm14 = vmneg %vm3226_vm12 }
  0x1a   : > { %v211_v12 = vld [vmem:[#allocation2 + $0x30] sm:$0x7f]  ;;  %v798_v28 = vld [vmem:[#allocation2 + $0x20] sm:$0x7f]  ;;  %vm3251_vm15 = vmpackc.low %vm281_vm2, %vm2484_vm14 }
  0x1b   : > { %v2849_v13 = vpack.i.bf16 %v211_v12, %v210_v10  ;;  %v1324_v14 = vld [vmem:[#allocation2 + $0x68] sm:$0x7f]  ;;  %2855 = vrot.lane.b32.xlu1 %v2854_v11, %s3092_s16  ;;  %v1326_v17 = vld [vmem:[#allocation2 + $0x78] sm:$0x7f]  ;;  %v2874_v20 = vpack.i.bf16 %v212_v9, %v211_v12  ;;  %v800_v26 = vld [vmem:[#allocation2 + $0x30] sm:$0x7f]  ;;  %v3039_v38 = vpack.i.bf16 %v798_v28, %v3135_v2 }
  0x1c   : > { %v1325_v15 = vld [vmem:[#allocation2 + $0x70] sm:$0x7f]  ;;  %v2869_v19 = vpack.i.bf16 %v3141_v5, %v1326_v17  ;;  %v2889_v23 = vpack.i.bf16 %v3133_v0, %v1326_v17  ;;  %v2899_v24 = vpack.i.bf16 %v3141_v5, %v1324_v14  ;;  %v2964_v27 = vpack.i.bf16 %v800_v26, %v799_v25  ;;  %v1904_v29 = vld [vmem:[#allocation2 + $0x68] sm:$0x7f]  ;;  %v1903_v35 = vld [vmem:[#allocation2 + $0x60] sm:$0x7f] }
  0x1d   : > { %2850 = vrot.lane.b32.xlu0 %v2849_v13, %s3092_s16  ;;  %v2864_v18 = vpack.i.bf16 %v1325_v15, %v1324_v14  ;;  %v2884_v22 = vpack.i.bf16 %v1325_v15, %v210_v10  ;;  %v2974_v31 = vpack.i.bf16 %v1904_v29, %v798_v28  ;;  %v1905_v32 = vld [vmem:[#allocation2 + $0x70] sm:$0x7f]  ;;  %v2989_v36 = vpack.i.bf16 %v3139_v4, %v1903_v35  ;;  %v2475_v28 = vld [vmem:[%s3655_s1 + $0x18] sm:$0xff]  ;;  %vm2504_vm14 = vmneg %vm3206_vm10 }
  0x1e   : > { %v2979_v33 = vpack.i.bf16 %v3135_v2, %v1905_v32  ;;  %v3034_v37 = vpack.i.bf16 %v1905_v32, %v1904_v29  ;;  %v3049_v39 = vpack.i.bf16 %v1903_v35, %v3139_v4  ;;  %v2474_v11 = vld [vmem:[%s3655_s1 + $0x10] sm:$0xff] }
  0x1f   : > { %2860 = vrot.lane.b32.xlu1 %v2859_v16, %s3092_s16 }
  0x21   : > { %2865 = vrot.lane.b32.xlu0 %v2864_v18, %s3092_s16 }
  0x23   : > { %2870 = vrot.lane.b32.xlu1 %v2869_v19, %s3092_s16 }
  0x25   : > { %2875 = vrot.lane.b32.xlu0 %v2874_v20, %s3094_s17 }
  0x27   : > { %2880 = vrot.lane.b32.xlu1 %v2844_v3, %s3094_s17 }
  0x29   : > { %2885 = vrot.lane.b32.xlu0 %v2884_v22, %s3094_s17 }
  0x2b   : > { %2890 = vrot.lane.b32.xlu1 %v2889_v23, %s3094_s17 }
  0x2d   : > { %2895 = vrot.lane.b32.xlu0 %v2859_v16, %s3094_s17 }
  0x2f   : > { %2900 = vrot.lane.b32.xlu1 %v2899_v24, %s3094_s17 }
  0x31   : > { %2905 = vrot.lane.b32.xlu0 %v2874_v20, %s3095_s18 }
  0x33   : > { %2910 = vrot.lane.b32.xlu1 %v2844_v3, %s3095_s18 }
  0x35   : > { %2915 = vrot.lane.b32.xlu0 %v2884_v22, %s3095_s18 }
  0x37   : > { %2920 = vrot.lane.b32.xlu1 %v2889_v23, %s3095_s18 }
  0x39   : > { %2925 = vrot.lane.b32.xlu0 %v2859_v16, %s3095_s18 }
  0x3b   : > { %2930 = vrot.lane.b32.xlu1 %v2899_v24, %s3095_s18 }
  0x3d   : > { %2935 = vrot.lane.b32.xlu0 %v2874_v20, %s3096_s19 }
  0x3f   : > { %2940 = vrot.lane.b32.xlu1 %v2844_v3, %s3096_s19 }
  0x41   : > { %2945 = vrot.lane.b32.xlu0 %v2884_v22, %s3096_s19 }
  0x43   : > { %2950 = vrot.lane.b32.xlu1 %v2889_v23, %s3096_s19 }
  0x45   : > { %2955 = vrot.lane.b32.xlu0 %v2859_v16, %s3096_s19 }
  0x47   : > { %2960 = vrot.lane.b32.xlu1 %v2899_v24, %s3096_s19 }
  0x49   : > { %2965 = vrot.lane.b32.xlu0 %v2964_v27, %s3097_s20 }
  0x4b   : > { %2970 = vrot.lane.b32.xlu1 %v2969_v30, %s3097_s20 }
  0x4d   : > { %2975 = vrot.lane.b32.xlu0 %v2974_v31, %s3097_s20 }
  0x4f   : > { %2980 = vrot.lane.b32.xlu1 %v2979_v33, %s3097_s20 }
  0x51   : > { %2985 = vrot.lane.b32.xlu0 %v2984_v34, %s3097_s20 }
  0x53   : > { %2990 = vrot.lane.b32.xlu1 %v2989_v36, %s3097_s20 }
  0x55   : > { %2995 = vrot.lane.b32.xlu0 %v2964_v27, %s3098_s21 }
  0x57   : > { %3000 = vrot.lane.b32.xlu1 %v2969_v30, %s3098_s21 }
  0x59   : > { %3005 = vrot.lane.b32.xlu0 %v2974_v31, %s3098_s21 }
  0x5b   : > { %3010 = vrot.lane.b32.xlu1 %v2979_v33, %s3098_s21 }
  0x5d   : > { %3015 = vrot.lane.b32.xlu0 %v2984_v34, %s3098_s21 }
  0x5f   : > { %3020 = vrot.lane.b32.xlu1 %v2989_v36, %s3098_s21 }
  0x61   : > { %3025 = vrot.lane.b32.xlu0 %v2964_v27, %s3099_s22 }
  0x63   : > { %3030 = vrot.lane.b32.xlu1 %v2969_v30, %s3099_s22 }
  0x65   : > { %3035 = vrot.lane.b32.xlu0 %v3034_v37, %s3099_s22 }
  0x67   : > { %3040 = vrot.lane.b32.xlu1 %v3039_v38, %s3099_s22 }
  0x69   : > { %3045 = vrot.lane.b32.xlu0 %v2984_v34, %s3099_s22 }
  0x6b   : > { %3050 = vrot.lane.b32.xlu1 %v3049_v39, %s3099_s22 }
  0x6d   : > { %3055 = vrot.lane.b32.xlu0 %v2964_v27, %s3100_s23 }
  0x6f   : > { %3060 = vrot.lane.b32.xlu1 %v2969_v30, %s3100_s23 }
  0x71   : > { %3065 = vrot.lane.b32.xlu0 %v2974_v31, %s3100_s23 }
  0x73   : > { %3070 = vrot.lane.b32.xlu1 %v2979_v33, %s3100_s23 }
  0x75   : > { %3075 = vrot.lane.b32.xlu0 %v2984_v34, %s3100_s23 }
  0x77   : > { %3080 = vrot.lane.b32.xlu1 %v2989_v36, %s3100_s23 }
  0x85   : > { %v2846_v41 = vpop.permute.xlu0 %2845 }
  0x86   : > { %v2848_v43 = vunpack.i.h.bf16 %v2846_v41  ;;  %v2847_v44 = vunpack.i.l.bf16 %v2846_v41 }
  0x88   : > { %v260_v52 = vsel %vm258_vm0, %v2847_v44, %v2848_v43 }
  0x8d   : > { %v2856_v45 = vpop.permute.xlu1 %2855 }
  0x8e   : > { %v2858_v46 = vunpack.i.h.bf16 %v2856_v45  ;;  %v2857_v47 = vunpack.i.l.bf16 %v2856_v45 }
  0x8f   : > { %v2851_v48 = vpop.permute.xlu0 %2850 }
  0x90   : > { %v2853_v50 = vunpack.i.h.bf16 %v2851_v48  ;;  %v2852_v51 = vunpack.i.l.bf16 %v2851_v48  ;;  %v259_v53 = vsel %vm258_vm0, %v2858_v46, %v2847_v44 }
  0x91   : > { %v2861_v54 = vpop.permute.xlu1 %2860 }
  0x92   : > { %v262_v55 = vsel %vm258_vm0, %v2853_v50, %v2857_v47  ;;  %v261_v57 = vsel %vm258_vm0, %v2852_v51, %v2853_v50  ;;  %v2863_v6 = vunpack.i.h.bf16 %v2861_v54  ;;  %v2862_v7 = vunpack.i.l.bf16 %v2861_v54 }
  0x93   : > { %v2866_v58 = vpop.permute.xlu0 %2865  ;;  %v2654_v59 = vpack.c.bf16 %v262_v55, %v260_v52  ;;  %v269_v60 = vsel %vm183_vm1, 0.0, %v261_v57 }
  0x94   : > { %v2868_v63 = vunpack.i.h.bf16 %v2866_v58  ;;  %v2867_v1 = vunpack.i.l.bf16 %v2866_v58  ;;  %v2657_v3 = vpack.c.bf16 %v269_v60, %v259_v53  ;;  %v1372_v19 = vsel %vm258_vm0, %v2862_v7, %v2863_v6 }
  0x95   : > { %2656 = vmatprep.subr.msk.bf16.mxu0 %vm3171_vm5, %v2654_v59  ;;  %v2871_v9 = vpop.permute.xlu1 %2870 }
  0x96   : > { %2659 = vmatpush1.bf16.msk.msra.mxu0 %vm3179_vm6, %v2657_v3  ;;  %v1373_v10 = vsel %vm258_vm0, %v2867_v1, %v2868_v63  ;;  %v2873_v12 = vunpack.i.h.bf16 %v2871_v9  ;;  %v2872_v13 = vunpack.i.l.bf16 %v2871_v9  ;;  %v244_v3 = vld [vmem:[%s3655_s1] sm:$0xff] }
  0x97   : > { %v2876_v15 = vpop.permute.xlu0 %2875  ;;  %v1381_v16 = vsel %vm183_vm1, 0.0, %v1373_v10 }
  0x98   : > { %v2878_v17 = vunpack.i.h.bf16 %v2876_v15  ;;  %v2877_v18 = vunpack.i.l.bf16 %v2876_v15  ;;  %v1374_v20 = vsel %vm258_vm0, %v2868_v63, %v2872_v13  ;;  %v1371_v22 = vsel %vm258_vm0, %v2873_v12, %v2862_v7 }
  0x99   : > { %2480 = vmatmul.mubr.msk.f32.vlgmr.msra.gmra.mrb[0].mxu0 %vm274_vm8, %v2474_v11  ;;  %v2881_v24 = vpop.permute.xlu1 %2880  ;;  %v2708_v26 = vpack.c.bf16 %v1374_v20, %v1372_v19  ;;  %v2711_v27 = vpack.c.bf16 %v1381_v16, %v1371_v22  ;;  %vm3261_vm0 = vcmp.eq.s32.totalorder %v166_v62, 15  ;;  %v245_v19 = vld [vmem:[%s3655_s1 + $0x8] sm:$0xff] }
  0x9a   : > { %v235_v25 = vsel %vm231_vm7, %v2877_v18, %v2878_v17  ;;  %358 = vmatprep.mubr.f32.mxu0 %v3093_v21  ;;  %v2883_v29 = vunpack.i.h.bf16 %v2881_v24  ;;  %v2882_v30 = vunpack.i.l.bf16 %v2881_v24  ;;  %vm2492_vm4 = vmneg %vm3261_vm0 }
  0x9b   : > { %v243_v31 = vsel %vm3195_vm9, 0.0, %v235_v25  ;;  %v2886_v32 = vpop.permute.xlu0 %2885  ;;  %2710 = vmatprep.subr.msk.bf16.mxu1 %vm3171_vm5, %v2708_v26 }
  0x9c   : > { %v2887_v34 = vunpack.i.l.bf16 %v2886_v32  ;;  %v233_v35 = vsel %vm231_vm7, %v2882_v30, %v2883_v29  ;;  %2713 = vmatpush1.bf16.msk.msra.mxu1 %vm3179_vm6, %v2711_v27  ;;  %v2888_v36 = vunpack.i.h.bf16 %v2886_v32  ;;  %vm3294_vm6 = vmor %vm183_vm1, %vm3277_vm3 }
  0x9d   : > { %2481 = vmatmul.mubr.msk.f32.gmra.mrb[2].mxu0 %vm274_vm8, %v2475_v28  ;;  %v2891_v38 = vpop.permute.xlu1 %2890  ;;  %v2660_v40 = vpack.c.bf16 %v243_v31, %v233_v35  ;;  %vm2494_vm1 = vmneg %vm3294_vm6 }
  0x9e   : > { %v234_v39 = vsel %vm231_vm7, %v2887_v34, %v2877_v18  ;;  %441 = vmatprep.mubr.f32.mxu0 %v3093_v21  ;;  %v2893_v41 = vunpack.i.h.bf16 %v2891_v38  ;;  %v2892_v43 = vunpack.i.l.bf16 %v2891_v38  ;;  %vm3322_vm11 = vmpackc.low %vm281_vm2, %vm2494_vm1 }
  0x9f   : > { %v2896_v44 = vpop.permute.xlu0 %2895  ;;  %2662 = vmatprep.subr.msk.bf16.mxu0 %vm3234_vm13, %v2660_v40  ;;  %2568 = vmatmul.mubr.msk.f32.vlgmr.msra.gmra.mrb[0].mxu1 %vm274_vm8, %v2474_v11  ;;  %v242_v50 = vsel %vm3226_vm12, 0.0, %v234_v39 }
  0xa0   : > { %v2898_v45 = vunpack.i.h.bf16 %v2896_v44  ;;  %v2897_v46 = vunpack.i.l.bf16 %v2896_v44  ;;  %v232_v47 = vsel %vm231_vm7, %v2893_v41, %v2882_v30  ;;  %v1348_v48 = vsel %vm231_vm7, %v2888_v36, %v2892_v43  ;;  %1467 = vmatprep.mubr.f32.mxu1 %v3093_v21 }
  0xa1   : > { %v1356_v52 = vsel %vm3195_vm9, 0.0, %v1348_v48  ;;  %v2663_v53 = vpack.c.bf16 %v242_v50, %v232_v47  ;;  %v2901_v54 = vpop.permute.xlu1 %2900  ;;  %v2490_v48 = vld [vmem:[%s3655_s1 + $0x20] sm:$0xff] }
  0xa2   : > { %v1346_v55 = vsel %vm231_vm7, %v2897_v46, %v2898_v45  ;;  %v2903_v57 = vunpack.i.h.bf16 %v2901_v54  ;;  %v2902_v58 = vunpack.i.l.bf16 %v2901_v54 }
  0xa3   : > { %v2714_v59 = vpack.c.bf16 %v1356_v52, %v1346_v55  ;;  %v2906_v61 = vpop.permute.xlu0 %2905  ;;  %2665 = vmatpush1.bf16.msk.msra.mxu0 %vm3251_vm15, %v2663_v53  ;;  %2569 = vmatmul.mubr.msk.f32.gmra.mrb[2].mxu1 %vm274_vm8, %v2475_v28 }
  0xa4   : > { %v2908_v63 = vunpack.i.h.bf16 %v2906_v61  ;;  %v2907_v1 = vunpack.i.l.bf16 %v2906_v61  ;;  %v1347_v6 = vsel %vm231_vm7, %v2902_v58, %v2888_v36  ;;  %v1345_v7 = vsel %vm231_vm7, %v2903_v57, %v2897_v46  ;;  %1550 = vmatprep.mubr.f32.mxu1 %v3093_v21  ;;  %vm3306_vm7 = vmpackc.low %vm281_vm2, %vm2492_vm4 }
  0xa5   : > { %2716 = vmatprep.subr.msk.bf16.mxu1 %vm3234_vm13, %v2714_v59  ;;  %v1355_v9 = vsel %vm3226_vm12, 0.0, %v1347_v6  ;;  %v2911_v10 = vpop.permute.xlu1 %2910  ;;  %vm586_vm12 = vcmask 7168   ;;  %vm819_vm4 = vcmask 1039360  }
  0xa6   : > { %v469_v11 = vsel %vm274_vm8, %v2907_v1, %v2908_v63  ;;  %v2717_v12 = vpack.c.bf16 %v1355_v9, %v1345_v7  ;;  %v2913_v13 = vunpack.i.h.bf16 %v2911_v10  ;;  %v2912_v15 = vunpack.i.l.bf16 %v2911_v10  ;;  %2488 = vmatmul.mubr.msk.f32.vlgmr.msra.gmra.mrb[0].mxu0 %vm274_vm8, %v244_v3 }
  0xa7   : > { %v477_v8 = vsel %vm3261_vm0, 0.0, %v469_v11  ;;  %v2916_v16 = vpop.permute.xlu0 %2915  ;;  %447 = vmatprep.mubr.f32.mxu0 %v3093_v21  ;;  %v698_v11 = vld [vmem:[#allocation2 + $0x28] sm:$0x7f] }
  0xa8   : > { %v2917_v18 = vunpack.i.l.bf16 %v2916_v16  ;;  %v467_v20 = vsel %vm274_vm8, %v2912_v15, %v2913_v13  ;;  %2719 = vmatpush1.bf16.msk.msra.mxu1 %vm3251_vm15, %v2717_v12  ;;  %v2918_v22 = vunpack.i.h.bf16 %v2916_v16  ;;  %vm3367_vm15 = vmpackc.low %vm281_vm2, %vm2504_vm14  ;;  %vm1061_vm14 = vcmask 916480  }
  0xa9   : > { %v2921_v24 = vpop.permute.xlu1 %2920  ;;  %v2666_v26 = vpack.c.bf16 %v477_v8, %v467_v20 }
  0xaa   : > { %v468_v25 = vsel %vm274_vm8, %v2917_v18, %v2907_v1  ;;  %v2923_v27 = vunpack.i.h.bf16 %v2921_v24  ;;  %v2922_v28 = vunpack.i.l.bf16 %v2921_v24  ;;  %2489 = vmatmul.mubr.msk.f32.gmra.mrb[2].mxu0 %vm274_vm8, %v245_v19  ;;  %v2491_v1 = vld [vmem:[%s3655_s1 + $0x28] sm:$0xff]  ;;  %v697_v24 = vld [vmem:[#allocation2 + $0x20] sm:$0x7f] }
  0xab   : > { %v2926_v29 = vpop.permute.xlu0 %2925  ;;  %2668 = vmatprep.subr.msk.bf16.mxu0 %vm3306_vm7, %v2666_v26  ;;  %2576 = vmatmul.mubr.msk.f32.vlgmr.msra.gmra.mrb[0].mxu1 %vm274_vm8, %v244_v3  ;;  %v476_v34 = vsel %vm3294_vm6, 0.0, %v468_v25 }
  0xac   : > { %v2928_v30 = vunpack.i.h.bf16 %v2926_v29  ;;  %v2927_v31 = vunpack.i.l.bf16 %v2926_v29  ;;  %v466_v32 = vsel %vm274_vm8, %v2923_v27, %v2912_v15  ;;  %v1578_v33 = vsel %vm274_vm8, %v2918_v22, %v2922_v28  ;;  %557 = vmatprep.mubr.f32.mxu0 %v3093_v21  ;;  %1556 = vmatprep.mubr.f32.mxu1 %v3093_v21 }
  0xad   : > { %v1586_v36 = vsel %vm3261_vm0, 0.0, %v1578_v33  ;;  %v2669_v38 = vpack.c.bf16 %v476_v34, %v466_v32  ;;  %v2931_v39 = vpop.permute.xlu1 %2930  ;;  %v1804_v33 = vld [vmem:[#allocation2 + $0x68] sm:$0x7f] }
  0xae   : > { %v1576_v40 = vsel %vm274_vm8, %v2927_v31, %v2928_v30  ;;  %v2933_v41 = vunpack.i.h.bf16 %v2931_v39  ;;  %v2932_v43 = vunpack.i.l.bf16 %v2931_v39 }
  0xaf   : > { %v2720_v44 = vpack.c.bf16 %v1586_v36, %v1576_v40  ;;  %v2936_v45 = vpop.permute.xlu0 %2935  ;;  %2671 = vmatpush1.bf16.msk.msra.mxu0 %vm3322_vm11, %v2669_v38  ;;  %2577 = vmatmul.mubr.msk.f32.gmra.mrb[2].mxu1 %vm274_vm8, %v245_v19  ;;  %v2681_v36 = vpack.c.bf16 %v697_v24, %v3135_v2  ;;  %v2732_v2 = vpack.c.bf16 %v1804_v33, %v3141_v5  ;;  %v2501_v5 = vld [vmem:[%s3655_s1 + $0x38] sm:$0xff]  ;;  %v2511_v24 = vld [vmem:[%s3655_s1 + $0x48] sm:$0xff] }
  0xb0   : > { %v2938_v46 = vunpack.i.h.bf16 %v2936_v45  ;;  %v2937_v47 = vunpack.i.l.bf16 %v2936_v45  ;;  %v1577_v50 = vsel %vm274_vm8, %v2932_v43, %v2918_v22  ;;  %v1575_v51 = vsel %vm274_vm8, %v2933_v41, %v2927_v31  ;;  %1665 = vmatprep.mubr.f32.mxu1 %v3093_v21 }
  0xb1   : > { %2722 = vmatprep.subr.msk.bf16.mxu1 %vm3306_vm7, %v2720_v44  ;;  %v1585_v52 = vsel %vm3294_vm6, 0.0, %v1577_v50  ;;  %v2941_v53 = vpop.permute.xlu1 %2940  ;;  %v2678_v22 = vpack.c.bf16 %v698_v11, %v3133_v0  ;;  %v2500_v0 = vld [vmem:[%s3655_s1 + $0x30] sm:$0xff]  ;;  %vm186_vm6 = vcmp.ge.s32.totalorder %v3163_v49, 240 }
  0xb2   : > { %v590_v54 = vsel %vm586_vm12, %v2937_v47, %v2938_v46  ;;  %v2723_v55 = vpack.c.bf16 %v1585_v52, %v1575_v51  ;;  %v2943_v57 = vunpack.i.h.bf16 %v2941_v53  ;;  %v2942_v58 = vunpack.i.l.bf16 %v2941_v53  ;;  %2498 = vmatmul.mubr.msk.f32.vlgmr.msra.gmra.mrb[0].mxu0 %vm274_vm8, %v2490_v48 }
  0xb3   : > { %v598_v59 = vsel %vm3195_vm9, 0.0, %v590_v54  ;;  %v2946_v61 = vpop.permute.xlu0 %2945  ;;  %563 = vmatprep.mubr.f32.mxu0 %v3093_v21 }
  0xb4   : > { %v2947_v63 = vunpack.i.l.bf16 %v2946_v61  ;;  %v588_v3 = vsel %vm586_vm12, %v2942_v58, %v2943_v57  ;;  %2725 = vmatpush1.bf16.msk.msra.mxu1 %vm3322_vm11, %v2723_v55  ;;  %v2948_v6 = vunpack.i.h.bf16 %v2946_v61  ;;  %vm940_vm11 = vcmask 924672  }
  0xb5   : > { %v2951_v7 = vpop.permute.xlu1 %2950  ;;  %v2672_v10 = vpack.c.bf16 %v598_v59, %v588_v3  ;;  %v2510_v3 = vld [vmem:[%s3655_s1 + $0x40] sm:$0xff] }
  0xb6   : > { %v589_v9 = vsel %vm586_vm12, %v2947_v63, %v2937_v47  ;;  %v2953_v12 = vunpack.i.h.bf16 %v2951_v7  ;;  %v2952_v13 = vunpack.i.l.bf16 %v2951_v7  ;;  %2499 = vmatmul.mubr.msk.f32.gmra.mrb[2].mxu0 %vm274_vm8, %v2491_v1 }
  0xb7   : > { %v2956_v15 = vpop.permute.xlu0 %2955  ;;  %2674 = vmatprep.subr.msk.bf16.mxu0 %vm3234_vm13, %v2672_v10  ;;  %2586 = vmatmul.mubr.msk.f32.vlgmr.msra.gmra.mrb[0].mxu1 %vm274_vm8, %v2490_v48  ;;  %v597_v19 = vsel %vm3206_vm10, 0.0, %v589_v9  ;;  %v1803_v48 = vld [vmem:[#allocation2 + $0x60] sm:$0x7f] }
  0xb8   : > { %v2958_v8 = vunpack.i.h.bf16 %v2956_v15  ;;  %v2957_v16 = vunpack.i.l.bf16 %v2956_v15  ;;  %v587_v17 = vsel %vm586_vm12, %v2953_v12, %v2942_v58  ;;  %v1697_v18 = vsel %vm586_vm12, %v2948_v6, %v2952_v13  ;;  %678 = vmatprep.mubr.f32.mxu0 %v3093_v21  ;;  %1671 = vmatprep.mubr.f32.mxu1 %v3093_v21 }
  0xb9   : > { %v1705_v25 = vsel %vm3195_vm9, 0.0, %v1697_v18  ;;  %v2675_v26 = vpack.c.bf16 %v597_v19, %v587_v17  ;;  %v2961_v27 = vpop.permute.xlu1 %2960  ;;  %v2735_v57 = vpack.c.bf16 %v1803_v48, %v3139_v4 }
  0xba   : > { %v1695_v28 = vsel %vm586_vm12, %v2957_v16, %v2958_v8  ;;  %v2963_v29 = vunpack.i.h.bf16 %v2961_v27  ;;  %v2962_v30 = vunpack.i.l.bf16 %v2961_v27 }
  0xbb   : > { %v2726_v31 = vpack.c.bf16 %v1705_v25, %v1695_v28  ;;  %v2966_v32 = vpop.permute.xlu0 %2965  ;;  %2677 = vmatpush1.bf16.msk.msra.mxu0 %vm3367_vm15, %v2675_v26  ;;  %2587 = vmatmul.mubr.msk.f32.gmra.mrb[2].mxu1 %vm274_vm8, %v2491_v1 }
  0xbc   : > { %v2968_v34 = vunpack.i.h.bf16 %v2966_v32  ;;  %v2967_v35 = vunpack.i.l.bf16 %v2966_v32  ;;  %v1696_v38 = vsel %vm586_vm12, %v2962_v30, %v2948_v6  ;;  %v1694_v39 = vsel %vm586_vm12, %v2963_v29, %v2957_v16  ;;  %2680 = vmatprep.subr.msk.bf16.mxu0 %vm3171_vm5, %v2678_v22  ;;  %1784 = vmatprep.mubr.f32.mxu1 %v3093_v21  ;;  %vm3445_vm12 = vmor %vm186_vm6, %vm3195_vm9 }
  0xbd   : > { %2728 = vmatprep.subr.msk.bf16.mxu1 %vm3234_vm13, %v2726_v31  ;;  %v1704_v40 = vsel %vm3206_vm10, 0.0, %v1696_v38  ;;  %v2971_v41 = vpop.permute.xlu1 %2970  ;;  %vm2520_vm13 = vmneg %vm3277_vm3 }
  0xbe   : > { %v823_v43 = vsel %vm819_vm4, %v2967_v35, %v2968_v34  ;;  %v2729_v44 = vpack.c.bf16 %v1704_v40, %v1694_v39  ;;  %v2973_v45 = vunpack.i.h.bf16 %v2971_v41  ;;  %v2972_v46 = vunpack.i.l.bf16 %v2971_v41  ;;  %2508 = vmatmul.mubr.msk.f32.vlgmr.msra.gmra.mrb[0].mxu0 %vm274_vm8, %v2500_v0  ;;  %vm3431_vm1 = vmpackc.low %vm281_vm2, %vm2520_vm13  ;;  %v2516_v34 = vld [vmem:[%s3655_s1 + $0x50] sm:$0xff] }
  0xbf   : > { %v831_v37 = vsel %vm3261_vm0, 0.0, %v823_v43  ;;  %v2976_v47 = vpop.permute.xlu0 %2975  ;;  %684 = vmatprep.mubr.f32.mxu0 %v3093_v21  ;;  %2683 = vmatpush1.bf16.msk.msra.mxu0 %vm3171_vm5, %v2681_v36  ;;  %vm2528_vm9 = vmneg %vm3445_vm12 }
  0xc0   : > { %v2977_v50 = vunpack.i.l.bf16 %v2976_v47  ;;  %v821_v51 = vsel %vm819_vm4, %v2972_v46, %v2973_v45  ;;  %2731 = vmatpush1.bf16.msk.msra.mxu1 %vm3367_vm15, %v2729_v44  ;;  %v2978_v52 = vunpack.i.h.bf16 %v2976_v47  ;;  %vm3557_vm13 = vmor %vm186_vm6, %vm3261_vm0 }
  0xc1   : > { %v2981_v54 = vpop.permute.xlu1 %2980  ;;  %v2684_v55 = vpack.c.bf16 %v831_v37, %v821_v51  ;;  %2734 = vmatprep.subr.msk.bf16.mxu1 %vm3171_vm5, %v2732_v2 }
  0xc2   : > { %v822_v53 = vsel %vm819_vm4, %v2977_v50, %v2967_v35  ;;  %v2983_v58 = vunpack.i.h.bf16 %v2981_v54  ;;  %v2982_v59 = vunpack.i.l.bf16 %v2981_v54  ;;  %2509 = vmatmul.mubr.msk.f32.gmra.mrb[2].mxu0 %vm274_vm8, %v2501_v5 }
  0xc3   : > { %v2986_v61 = vpop.permute.xlu0 %2985  ;;  %2686 = vmatprep.subr.msk.bf16.mxu0 %vm3306_vm7, %v2684_v55  ;;  %2596 = vmatmul.mubr.msk.f32.vlgmr.msra.gmra.mrb[0].mxu1 %vm274_vm8, %v2500_v0  ;;  %v830_v4 = vsel %vm3277_vm3, 0.0, %v822_v53 }
  0xc4   : > { %v2988_v63 = vunpack.i.h.bf16 %v2986_v61  ;;  %v2987_v1 = vunpack.i.l.bf16 %v2986_v61  ;;  %v820_v6 = vsel %vm819_vm4, %v2983_v58, %v2972_v46  ;;  %v1927_v7 = vsel %vm819_vm4, %v2978_v52, %v2982_v59  ;;  %778 = vmatprep.mubr.f32.mxu0 %v3093_v21  ;;  %1790 = vmatprep.mubr.f32.mxu1 %v3093_v21  ;;  %v2517_v46 = vld [vmem:[%s3655_s1 + $0x58] sm:$0xff]  ;;  %v2526_v61 = vld [vmem:[%s3655_s1 + $0x60] sm:$0xff] }
  0xc5   : > { %v2687_v10 = vpack.c.bf16 %v830_v4, %v820_v6  ;;  %v1935_v11 = vsel %vm3261_vm0, 0.0, %v1927_v7  ;;  %v2991_v13 = vpop.permute.xlu1 %2990  ;;  %2737 = vmatpush1.bf16.msk.msra.mxu1 %vm3171_vm5, %v2735_v57  ;;  %vm2546_vm0 = vmneg %vm3557_vm13 }
  0xc6   : > { %v1925_v12 = vsel %vm819_vm4, %v2987_v1, %v2988_v63  ;;  %v2993_v8 = vunpack.i.h.bf16 %v2991_v13  ;;  %v2992_v16 = vunpack.i.l.bf16 %v2991_v13  ;;  %2514 = vmatmul.mubr.msk.f32.vlgmr.msra.gmra.mrb[0].mxu0 %vm274_vm8, %v2510_v3 }
  0xc7   : > { %v2738_v15 = vpack.c.bf16 %v1935_v11, %v1925_v12  ;;  %v2996_v17 = vpop.permute.xlu0 %2995  ;;  %2689 = vmatpush1.bf16.msk.msra.mxu0 %vm3431_vm1, %v2687_v10  ;;  %2597 = vmatmul.mubr.msk.f32.gmra.mrb[2].mxu1 %vm274_vm8, %v2501_v5 }
  0xc8   : > { %v2998_v19 = vunpack.i.h.bf16 %v2996_v17  ;;  %v2997_v22 = vunpack.i.l.bf16 %v2996_v17  ;;  %v1924_v25 = vsel %vm819_vm4, %v2993_v8, %v2987_v1  ;;  %v1926_v14 = vsel %vm819_vm4, %v2992_v16, %v2978_v52  ;;  %1883 = vmatprep.mubr.f32.mxu1 %v3093_v21  ;;  %784 = vmatprep.mubr.f32.mxu0 %v3093_v21  ;;  %vm3517_vm4 = vmneg %vm186_vm6  ;;  %v2527_v16 = vld [vmem:[%s3655_s1 + $0x68] sm:$0xff] }
  0xc9   : > { %2740 = vmatprep.subr.msk.bf16.mxu1 %vm3306_vm7, %v2738_v15  ;;  %v1934_v26 = vsel %vm3277_vm3, 0.0, %v1926_v14  ;;  %v3001_v28 = vpop.permute.xlu1 %3000  ;;  %vm3478_vm7 = vmpackc.low %vm281_vm2, %vm2528_vm9 }
  0xca   : > { %v944_v27 = vsel %vm940_vm11, %v2997_v22, %v2998_v19  ;;  %v2741_v29 = vpack.c.bf16 %v1934_v26, %v1924_v25  ;;  %v3003_v30 = vunpack.i.h.bf16 %v3001_v28  ;;  %v3002_v31 = vunpack.i.l.bf16 %v3001_v28  ;;  %2515 = vmatmul.mubr.msk.f32.gmra.mrb[2].mxu0 %vm274_vm8, %v2511_v24 }
  0xcb   : > { %v3006_v32 = vpop.permute.xlu0 %3005  ;;  %v952_v42 = vsel %vm3445_vm12, 0.0, %v944_v27  ;;  %2602 = vmatmul.mubr.msk.f32.vlgmr.msra.gmra.mrb[0].mxu1 %vm274_vm8, %v2510_v3  ;;  %911 = vmatprep.mubr.f32.mxu0 %v3093_v21 }
  0xcc   : > { %v3007_v33 = vunpack.i.l.bf16 %v3006_v32  ;;  %v942_v35 = vsel %vm940_vm11, %v3002_v31, %v3003_v30  ;;  %2743 = vmatpush1.bf16.msk.msra.mxu1 %vm3431_vm1, %v2741_v29  ;;  %v3008_v0 = vunpack.i.h.bf16 %v3006_v32  ;;  %1889 = vmatprep.mubr.f32.mxu1 %v3093_v21 }
  0xcd   : > { %v3011_v39 = vpop.permute.xlu1 %3010  ;;  %v2690_v40 = vpack.c.bf16 %v952_v42, %v942_v35 }
  0xce   : > { %v943_v38 = vsel %vm940_vm11, %v3007_v33, %v2997_v22  ;;  %v3013_v41 = vunpack.i.h.bf16 %v3011_v39  ;;  %v3012_v43 = vunpack.i.l.bf16 %v3011_v39  ;;  %2524 = vmatmul.mubr.msk.f32.vlgmr.msra.gmra.mrb[0].mxu0 %vm274_vm8, %v2516_v34 }
  0xcf   : > { %v3016_v2 = vpop.permute.xlu0 %3015  ;;  %2692 = vmatprep.subr.msk.bf16.mxu0 %vm3478_vm7, %v2690_v40  ;;  %2603 = vmatmul.mubr.msk.f32.gmra.mrb[2].mxu1 %vm274_vm8, %v2511_v24  ;;  %v951_v37 = vsel %vm3206_vm10, 0.0, %v943_v38  ;;  %v2536_v40 = vld [vmem:[%s3655_s1 + $0x70] sm:$0xff] }
  0xd0   : > { %v3018_v44 = vunpack.i.h.bf16 %v3016_v2  ;;  %v3017_v45 = vunpack.i.l.bf16 %v3016_v2  ;;  %v941_v47 = vsel %vm940_vm11, %v3013_v41, %v3002_v31  ;;  %v2046_v48 = vsel %vm940_vm11, %v3008_v0, %v3012_v43  ;;  %2014 = vmatprep.mubr.f32.mxu1 %v3093_v21  ;;  %917 = vmatprep.mubr.f32.mxu0 %v3093_v21 }
  0xd1   : > { %v2693_v50 = vpack.c.bf16 %v951_v37, %v941_v47  ;;  %v2054_v51 = vsel %vm3445_vm12, 0.0, %v2046_v48  ;;  %v3021_v52 = vpop.permute.xlu1 %3020  ;;  %v2537_v48 = vld [vmem:[%s3655_s1 + $0x78] sm:$0xff] }
  0xd2   : > { %v2044_v5 = vsel %vm940_vm11, %v3017_v45, %v3018_v44  ;;  %v3023_v54 = vunpack.i.h.bf16 %v3021_v52  ;;  %v3022_v55 = vunpack.i.l.bf16 %v3021_v52  ;;  %2525 = vmatmul.mubr.msk.f32.gmra.mrb[2].mxu0 %vm274_vm8, %v2517_v46 }
  0xd3   : > { %v2744_v53 = vpack.c.bf16 %v2054_v51, %v2044_v5  ;;  %v3026_v57 = vpop.permute.xlu0 %3025  ;;  %2695 = vmatpush1.bf16.msk.msra.mxu0 %vm3367_vm15, %v2693_v50  ;;  %2612 = vmatmul.mubr.msk.f32.vlgmr.msra.gmra.mrb[0].mxu1 %vm274_vm8, %v2516_v34 }
  0xd4   : > { %v3028_v58 = vunpack.i.h.bf16 %v3026_v57  ;;  %v3027_v59 = vunpack.i.l.bf16 %v3026_v57  ;;  %v2043_v63 = vsel %vm940_vm11, %v3023_v54, %v3017_v45  ;;  %v2045_v1 = vsel %vm940_vm11, %v3022_v55, %v3008_v0  ;;  %1032 = vmatprep.mubr.f32.mxu0 %v3093_v21  ;;  %2020 = vmatprep.mubr.f32.mxu1 %v3093_v21 }
  0xd5   : > { %2746 = vmatprep.subr.msk.bf16.mxu1 %vm3478_vm7, %v2744_v53  ;;  %v2053_v3 = vsel %vm3206_vm10, 0.0, %v2045_v1  ;;  %v3031_v6 = vpop.permute.xlu1 %3030  ;;  %vm3536_vm10 = vmpackc.low %vm281_vm2, %vm3517_vm4 }
  0xd6   : > { %v1065_v4 = vsel %vm1061_vm14, %v3027_v59, %v3028_v58  ;;  %v2747_v10 = vpack.c.bf16 %v2053_v3, %v2043_v63  ;;  %v3033_v12 = vunpack.i.h.bf16 %v3031_v6  ;;  %v3032_v13 = vunpack.i.l.bf16 %v3031_v6  ;;  %2534 = vmatmul.mubr.msk.f32.vlgmr.msra.gmra.mrb[0].mxu0 %vm274_vm8, %v2526_v61 }
  0xd7   : > { %v1073_v11 = vsel %vm186_vm6, 0.0, %v1065_v4  ;;  %v3036_v15 = vpop.permute.xlu0 %3035  ;;  %2613 = vmatmul.mubr.msk.f32.gmra.mrb[2].mxu1 %vm274_vm8, %v2517_v46  ;;  %1038 = vmatprep.mubr.f32.mxu0 %v3093_v21 }
  0xd8   : > { %v3038_v23 = vunpack.i.h.bf16 %v3036_v15  ;;  %v3037_v8 = vunpack.i.l.bf16 %v3036_v15  ;;  %v1063_v17 = vsel %vm1061_vm14, %v3032_v13, %v3033_v12  ;;  %2749 = vmatpush1.bf16.msk.msra.mxu1 %vm3367_vm15, %v2747_v10  ;;  %2133 = vmatprep.mubr.f32.mxu1 %v3093_v21  ;;  %vm1182_vm15 = vcmask 908288  }
  0xd9   : > { %v2696_v19 = vpack.c.bf16 %v1073_v11, %v1063_v17  ;;  %v3041_v24 = vpop.permute.xlu1 %3040  ;;  %v2545_v17 = vld [vmem:[%s3655_s1 + $0x88] sm:$0xff] }
  0xda   : > { %v2165_v22 = vsel %vm1061_vm14, %v3037_v8, %v3038_v23  ;;  %v3043_v25 = vunpack.i.h.bf16 %v3041_v24  ;;  %v3042_v14 = vunpack.i.l.bf16 %v3041_v24  ;;  %2535 = vmatmul.mubr.msk.f32.gmra.mrb[2].mxu0 %vm274_vm8, %v2527_v16 }
  0xdb   : > { %v3046_v26 = vpop.permute.xlu0 %3045  ;;  %v2173_v20 = vsel %vm186_vm6, 0.0, %v2165_v22  ;;  %2698 = vmatprep.subr.msk.bf16.mxu0 %vm3536_vm10, %v2696_v19  ;;  %2622 = vmatmul.mubr.msk.f32.vlgmr.msra.gmra.mrb[0].mxu1 %vm274_vm8, %v2526_v61  ;;  %vm3586_vm6 = vmpackc.low %vm281_vm2, %vm2546_vm0 }
  0xdc   : > { %v3048_v27 = vunpack.i.h.bf16 %v3046_v26  ;;  %v3047_v28 = vunpack.i.l.bf16 %v3046_v26  ;;  %v1064_v29 = vsel %vm1061_vm14, %v3043_v25, %v3027_v59  ;;  %v1062_v30 = vsel %vm1061_vm14, %v3042_v14, %v3032_v13  ;;  %1153 = vmatprep.mubr.f32.mxu0 %v3093_v21  ;;  %2139 = vmatprep.mubr.f32.mxu1 %v3093_v21  ;;  %v2544_v13 = vld [vmem:[%s3655_s1 + $0x80] sm:$0xff] }
  0xdd   : > { %v2699_v31 = vpack.c.bf16 %v1064_v29, %v1062_v30  ;;  %v3051_v42 = vpop.permute.xlu1 %3050 }
  0xde   : > { %v2163_v32 = vsel %vm1061_vm14, %v3047_v28, %v3048_v27  ;;  %v3053_v34 = vunpack.i.h.bf16 %v3051_v42  ;;  %v3052_v35 = vunpack.i.l.bf16 %v3051_v42 }
  0xdf   : > { %v2750_v33 = vpack.c.bf16 %v2173_v20, %v2163_v32  ;;  %v3056_v0 = vpop.permute.xlu0 %3055  ;;  %2701 = vmatpush1.bf16.msk.msra.mxu0 %vm3171_vm5, %v2699_v31  ;;  %2623 = vmatmul.mubr.msk.f32.gmra.mrb[2].mxu1 %vm274_vm8, %v2527_v16 }
  0xe0   : > { %v3058_v38 = vunpack.i.h.bf16 %v3056_v0  ;;  %v3057_v39 = vunpack.i.l.bf16 %v3056_v0  ;;  %v2164_v41 = vsel %vm1061_vm14, %v3053_v34, %v3037_v8  ;;  %v2162_v60 = vsel %vm1061_vm14, %v3052_v35, %v3047_v28  ;;  %2252 = vmatprep.mubr.f32.mxu1 %v3093_v21 }
  0xe1   : > { %2752 = vmatprep.subr.msk.bf16.mxu1 %vm3536_vm10, %v2750_v33  ;;  %v2753_v49 = vpack.c.bf16 %v2164_v41, %v2162_v60  ;;  %v3061_v2 = vpop.permute.xlu1 %3060 }
  0xe2   : > { %v1186_v43 = vsel %vm1182_vm15, %v3057_v39, %v3058_v38  ;;  %v3063_v44 = vunpack.i.h.bf16 %v3061_v2  ;;  %v3062_v45 = vunpack.i.l.bf16 %v3061_v2  ;;  %2542 = vmatmul.mubr.msk.f32.vlgmr.msra.gmra.mrb[0].mxu0 %vm274_vm8, %v2536_v40 }
  0xe3   : > { %v3066_v46 = vpop.permute.xlu0 %3065  ;;  %v1194_v37 = vsel %vm3557_vm13, 0.0, %v1186_v43  ;;  %2755 = vmatpush1.bf16.msk.msra.mxu1 %vm3171_vm5, %v2753_v49  ;;  %1159 = vmatprep.mubr.f32.mxu0 %v3093_v21 }
  0xe4   : > { %v3067_v47 = vunpack.i.l.bf16 %v3066_v46  ;;  %v1184_v50 = vsel %vm1182_vm15, %v3062_v45, %v3063_v44  ;;  %v3068_v5 = vunpack.i.h.bf16 %v3066_v46 }
  0xe5   : > { %v3071_v53 = vpop.permute.xlu1 %3070  ;;  %v2702_v56 = vpack.c.bf16 %v1194_v37, %v1184_v50 }
  0xe6   : > { %v1185_v52 = vsel %vm1182_vm15, %v3067_v47, %v3057_v39  ;;  %v3073_v54 = vunpack.i.h.bf16 %v3071_v53  ;;  %v3072_v55 = vunpack.i.l.bf16 %v3071_v53  ;;  %2543 = vmatmul.mubr.msk.f32.gmra.mrb[2].mxu0 %vm274_vm8, %v2537_v48  ;;  %2630 = vmatmul.mubr.msk.f32.vlgmr.msra.gmra.mrb[0].mxu1 %vm274_vm8, %v2536_v40 }
  0xe7   : > { %v3076_v57 = vpop.permute.xlu0 %3075  ;;  %2704 = vmatprep.subr.msk.bf16.mxu0 %vm3586_vm6, %v2702_v56  ;;  %1274 = vmatprep.mubr.f32.mxu0 %v3093_v21  ;;  %v1193_v61 = vsel %vm3277_vm3, 0.0, %v1185_v52 }
  0xe8   : > { %v3078_v58 = vunpack.i.h.bf16 %v3076_v57  ;;  %v3077_v59 = vunpack.i.l.bf16 %v3076_v57  ;;  %v1183_v63 = vsel %vm1182_vm15, %v3073_v54, %v3062_v45  ;;  %v2284_v1 = vsel %vm1182_vm15, %v3068_v5, %v3072_v55  ;;  %2258 = vmatprep.mubr.f32.mxu1 %v3093_v21 }
  0xe9   : > { %v2705_v3 = vpack.c.bf16 %v1193_v61, %v1183_v63  ;;  %v2292_v6 = vsel %vm3557_vm13, 0.0, %v2284_v1  ;;  %v3081_v7 = vpop.permute.xlu1 %3080 }
  0xea   : > { %v2282_v4 = vsel %vm1182_vm15, %v3077_v59, %v3078_v58  ;;  %v3083_v11 = vunpack.i.h.bf16 %v3081_v7  ;;  %v3082_v12 = vunpack.i.l.bf16 %v3081_v7  ;;  %2631 = vmatmul.mubr.msk.f32.gmra.mrb[2].mxu1 %vm274_vm8, %v2537_v48 }
  0xeb   : > { %v2756_v10 = vpack.c.bf16 %v2292_v6, %v2282_v4  ;;  %2707 = vmatpush1.bf16.msk.msra.mxu0 %vm3431_vm1, %v2705_v3  ;;  %2371 = vmatprep.mubr.f32.mxu1 %v3093_v21 }
  0xec   : > { %v2281_v15 = vsel %vm1182_vm15, %v3083_v11, %v3077_v59  ;;  %v2283_v23 = vsel %vm1182_vm15, %v3082_v12, %v3068_v5 }
  0xed   : > { %2758 = vmatprep.subr.msk.bf16.mxu1 %vm3586_vm6, %v2756_v10  ;;  %v2291_v8 = vsel %vm3277_vm3, 0.0, %v2283_v23 }
  0xee   : > { %v2759_v16 = vpack.c.bf16 %v2291_v8, %v2281_v15  ;;  %2552 = vmatmul.mubr.msk.f32.vlgmr.msra.gmra.mrb[0].mxu0 %vm274_vm8, %v2544_v13 }
  0xef   : > { %1280 = vmatprep.mubr.f32.mxu0 %v3093_v21 }
  0xf0   : > { %2761 = vmatpush1.bf16.msk.msra.mxu1 %vm3431_vm1, %v2759_v16 }
  0xf2   : > { %2553 = vmatmul.mubr.msk.f32.gmra.mrb[2].mxu0 %vm274_vm8, %v2545_v17 }
  0xf3   : > { %2640 = vmatmul.mubr.msk.f32.vlgmr.msra.gmra.mrb[0].mxu1 %vm274_vm8, %v2544_v13 }
  0xf4   : > { %2377 = vmatprep.mubr.f32.mxu1 %v3093_v21 }
  0xf7   : > { %2641 = vmatmul.mubr.msk.f32.gmra.mrb[2].mxu1 %vm274_vm8, %v2545_v17 }
 0x1c1   : > { %v1276_v62 = vpop.f32.mrb[0].mxu0 }
 0x1c2   : > { %vm1291_vm2 = vcmp.gt.f32.partialorder %v1276_v62, 69.968  ;;  %v1278_v9 = vpop.f32.mrb[1].mxu0 }
 0x1c3   : > { %v2554_v18 = vsel %vm1291_vm2, 1.0, %v3093_v21  ;;  %vm1292_vm5 = vcmp.gt.f32.partialorder %v1278_v9, 69.968 }
 0x1c4   : > { %1303 = vst [vmem:[%s3633_s10] sm:$0xff] %v2554_v18  ;;  %v2555_v19 = vsel %vm1292_vm5, 1.0, %v3093_v21 }
 0x1c5   : > { %1304 = vst [vmem:[%s3633_s10 + $0x8] sm:$0xff] %v2555_v19  ;;  %v1282_v22 = vpop.f32.mrb[2].mxu0 }
 0x1c6   : > { %vm1293_vm8 = vcmp.gt.f32.partialorder %v1282_v22, 69.968  ;;  %v2373_v24 = vpop.f32.mrb[0].mxu1  ;;  %v1284_v25 = vpop.f32.mrb[3].mxu0 }
 0x1c7   : > { %v2556_v14 = vsel %vm1293_vm8, 1.0, %v3093_v21  ;;  %vm2388_vm3 = vcmp.gt.f32.partialorder %v2373_v24, 69.968  ;;  %vm1294_vm1 = vcmp.gt.f32.partialorder %v1284_v25, 69.968  ;;  %v2375_v26 = vpop.f32.mrb[1].mxu1 }
 0x1c8   : > { %1305 = vst [vmem:[%s3633_s10 + $0x10] sm:$0xff] %v2556_v14  ;;  %v2642_v20 = vsel %vm2388_vm3, 1.0, %v3093_v21  ;;  %v2557_v27 = vsel %vm1294_vm1, 1.0, %v3093_v21  ;;  %vm2389_vm11 = vcmp.gt.f32.partialorder %v2375_v26, 69.968 }
 0x1c9   : > { %2646 = vst [vmem:[%s3633_s10 + $0x20] sm:$0xff] %v2642_v20  ;;  %1306 = vst [vmem:[%s3633_s10 + $0x18] sm:$0xff] %v2557_v27  ;;  %v2643_v28 = vsel %vm2389_vm11, 1.0, %v3093_v21 }
 0x1ca   : > { %2647 = vst [vmem:[%s3633_s10 + $0x28] sm:$0xff] %v2643_v28  ;;  %v2379_v29 = vpop.f32.mrb[2].mxu1 }
 0x1cb   : > { %vm2390_vm12 = vcmp.gt.f32.partialorder %v2379_v29, 69.968  ;;  %v2381_v30 = vpop.f32.mrb[3].mxu1 }
 0x1cc   : > { %v2644_v31 = vsel %vm2390_vm12, 1.0, %v3093_v21  ;;  %vm2391_vm9 = vcmp.gt.f32.partialorder %v2381_v30, 69.968 }
 0x1cd   : > { %2648 = vst [vmem:[%s3633_s10 + $0x30] sm:$0xff] %v2644_v31  ;;  %v2645_v32 = vsel %vm2391_vm9, 1.0, %v3093_v21 }
 0x1ce   : > { %2649 = vst [vmem:[%s3633_s10 + $0x38] sm:$0xff] %v2645_v32 }
 0x1cf PF: > { %s12_s9 = sadd.s32 1, %s3090_s9  }
 0x1d0   : > { %p9_p4 = scmp.ge.s32.totalorder %s12_s9, 4  }
 0x1d2   :  { %11 = sbr.rel (!%p9_p4) target bundleno = 1 (0x1), region = 69 }

</bundles_post_ra>
